<compile_context>
chip_gen: v6e
topology: v6e:2x2x1
jax: 0.10.0
libtpu: 0.0.40
codegen_flags: <defaults>
</compile_context>

<pallas_src>
import functools
import math

import jax
import jax.numpy as jnp
from jax.experimental import pallas as pl
from jax.experimental.pallas import tpu as pltpu


_MATMUL_VMEM_LIMIT = 28 * 1024 * 1024   # explicit budget: fits v5e/v6e/v7x scoped VMEM


# ----------------------------- tiling helpers -----------------------------

def _pick_tile(dim, candidates):
    """Largest candidate that evenly divides `dim`; small dims use the full dim;
    large non-divisible dims fail cleanly instead of creating an oversized block."""
    for c in candidates:
        if dim % c == 0:
            return c
    if dim <= max(candidates):
        return dim
    raise ValueError(
        f"dimension {dim} is not divisible by any tile candidate {candidates}; "
        "pad the input to a tileable size")


# ----------------------------- matmul epilogues -----------------------------

def _bias_act(y_f32, b_ref, act):
    y = y_f32 + b_ref[...].astype(jnp.float32)
    if act == "gelu":
        # tanh-approximation GELU (HF exact-erf GELU differs slightly).
        y = 0.5 * y * (1.0 + jnp.tanh(0.7978845608028654
                                      * (y + 0.044715 * y * y * y)))
    elif act == "tanh":
        y = jnp.tanh(y)
    return y


def _add_layernorm(y_f32, r_ref, g_ref, b_ref, eps):
    y = y_f32 + r_ref[...].astype(jnp.float32)
    mu = jnp.mean(y, axis=-1, keepdims=True)
    var = jnp.mean(jnp.square(y - mu), axis=-1, keepdims=True)
    y = (y - mu) * jax.lax.rsqrt(var + eps)
    return y * g_ref[...] + b_ref[...]


# ----------------------------- linear (tiled matmul) -----------------------------

def _linear_kernel(x_ref, w_ref, b_ref, o_ref, acc_ref, *, act):
    """K-tiled matmul with f32 accumulator; bias (+ gelu / tanh) epilogue in f32."""
    k = pl.program_id(2)

    @pl.when(k == 0)
    def _():
        acc_ref[...] = jnp.zeros_like(acc_ref)

    acc_ref[...] += jnp.dot(x_ref[...], w_ref[...],
                            preferred_element_type=jnp.float32)

    @pl.when(k == pl.num_programs(2) - 1)
    def _():
        o_ref[...] = _bias_act(acc_ref[...], b_ref, act).astype(o_ref.dtype)


def _linear_single_kernel(x_ref, w_ref, b_ref, o_ref, *, act):
    """Single K-step matmul: no accumulator scratch, no init/finalize."""
    y = jnp.dot(x_ref[...], w_ref[...], preferred_element_type=jnp.float32)
    o_ref[...] = _bias_act(y, b_ref, act).astype(o_ref.dtype)


def linear(x, w, b, act=None):
    M, K = x.shape
    N = w.shape[1]
    tm = _pick_tile(M, (512, 256, 128))
    tn = _pick_tile(N, (512, 256, 128))
    b2 = b.reshape(1, N)
    params = pltpu.CompilerParams(
        dimension_semantics=("parallel", "parallel", "arbitrary"),
        vmem_limit_bytes=_MATMUL_VMEM_LIMIT)

    if K <= 1024:
        # No K axis: whole reduction in one MXU pass, bias/act epilogue inline.
        return pl.pallas_call(
            functools.partial(_linear_single_kernel, act=act),
            out_shape=jax.ShapeDtypeStruct((M, N), x.dtype),
            grid=(M // tm, N // tn),
            in_specs=[
                pl.BlockSpec((tm, K), lambda i, j: (i, 0)),
                pl.BlockSpec((K, tn), lambda i, j: (0, j)),
                pl.BlockSpec((1, tn), lambda i, j: (0, j)),
            ],
            out_specs=pl.BlockSpec((tm, tn), lambda i, j: (i, j)),
            compiler_params=pltpu.CompilerParams(
                dimension_semantics=("parallel", "parallel"),
                vmem_limit_bytes=_MATMUL_VMEM_LIMIT),
        )(x, w, b2)

    tk = _pick_tile(K, (512, 256, 128))
    return pl.pallas_call(
        functools.partial(_linear_kernel, act=act),
        out_shape=jax.ShapeDtypeStruct((M, N), x.dtype),
        grid=(M // tm, N // tn, K // tk),
        in_specs=[
            pl.BlockSpec((tm, tk), lambda i, j, k: (i, k)),
            pl.BlockSpec((tk, tn), lambda i, j, k: (k, j)),
            pl.BlockSpec((1, tn), lambda i, j, k: (0, j)),
        ],
        out_specs=pl.BlockSpec((tm, tn), lambda i, j, k: (i, j)),
        scratch_shapes=[pltpu.VMEM((tm, tn), jnp.float32)],
        compiler_params=params,
    )(x, w, b2)


# ------------------- linear + residual-add + layernorm (fused epilogue) -------------------

def _linear_ln_kernel(x_ref, w_ref, b_ref, r_ref, g_ref, bb_ref, o_ref, acc_ref, *, eps):
    k = pl.program_id(1)

    @pl.when(k == 0)
    def _():
        acc_ref[...] = jnp.zeros_like(acc_ref)

    acc_ref[...] += jnp.dot(x_ref[...], w_ref[...],
                            preferred_element_type=jnp.float32)

    @pl.when(k == pl.num_programs(1) - 1)
    def _():
        y = acc_ref[...] + b_ref[...].astype(jnp.float32)
        o_ref[...] = _add_layernorm(y, r_ref, g_ref, bb_ref, eps).astype(o_ref.dtype)


def _linear_ln_single_kernel(x_ref, w_ref, b_ref, r_ref, g_ref, bb_ref, o_ref, *, eps):
    y = jnp.dot(x_ref[...], w_ref[...], preferred_element_type=jnp.float32)
    y = y + b_ref[...].astype(jnp.float32)
    o_ref[...] = _add_layernorm(y, r_ref, g_ref, bb_ref, eps).astype(o_ref.dtype)


def linear_add_layernorm(x, w, b, residual, gamma, beta, eps=1e-12):
    """out = LayerNorm(x @ w + b + residual); N is NOT tiled so the full row is
    resident for the layernorm epilogue (N == hidden size)."""
    M, K = x.shape
    N = w.shape[1]
    tm = _pick_tile(M, (512, 256, 128))
    b2 = b.reshape(1, N)
    g2 = gamma.reshape(1, N)
    bb2 = beta.reshape(1, N)

    if K <= 1024:
        return pl.pallas_call(
            functools.partial(_linear_ln_single_kernel, eps=eps),
            out_shape=jax.ShapeDtypeStruct((M, N), x.dtype),
            grid=(M // tm,),
            in_specs=[
                pl.BlockSpec((tm, K), lambda i: (i, 0)),
                pl.BlockSpec((K, N), lambda i: (0, 0)),
                pl.BlockSpec((1, N), lambda i: (0, 0)),
                pl.BlockSpec((tm, N), lambda i: (i, 0)),
                pl.BlockSpec((1, N), lambda i: (0, 0)),
                pl.BlockSpec((1, N), lambda i: (0, 0)),
            ],
            out_specs=pl.BlockSpec((tm, N), lambda i: (i, 0)),
            compiler_params=pltpu.CompilerParams(
                dimension_semantics=("parallel",),
                vmem_limit_bytes=_MATMUL_VMEM_LIMIT),
        )(x, w, b2, residual, g2, bb2)

    tk = _pick_tile(K, (512, 256, 128))
    return pl.pallas_call(
        functools.partial(_linear_ln_kernel, eps=eps),
        out_shape=jax.ShapeDtypeStruct((M, N), x.dtype),
        grid=(M // tm, K // tk),
        in_specs=[
            pl.BlockSpec((tm, tk), lambda i, k: (i, k)),
            pl.BlockSpec((tk, N), lambda i, k: (k, 0)),
            pl.BlockSpec((1, N), lambda i, k: (0, 0)),
            pl.BlockSpec((tm, N), lambda i, k: (i, 0)),
            pl.BlockSpec((1, N), lambda i, k: (0, 0)),
            pl.BlockSpec((1, N), lambda i, k: (0, 0)),
        ],
        out_specs=pl.BlockSpec((tm, N), lambda i, k: (i, 0)),
        scratch_shapes=[pltpu.VMEM((tm, N), jnp.float32)],
        compiler_params=pltpu.CompilerParams(
            dimension_semantics=("parallel", "arbitrary"),
            vmem_limit_bytes=_MATMUL_VMEM_LIMIT),
    )(x, w, b2, residual, g2, bb2)


# ----------------------------- layernorm (row-tiled, embeddings only) -----------------------------

def _layernorm_kernel(x_ref, g_ref, b_ref, o_ref, *, eps):
    x = x_ref[...].astype(jnp.float32)
    mu = jnp.mean(x, axis=-1, keepdims=True)
    var = jnp.mean(jnp.square(x - mu), axis=-1, keepdims=True)
    y = (x - mu) * jax.lax.rsqrt(var + eps)
    o_ref[...] = (y * g_ref[...] + b_ref[...]).astype(o_ref.dtype)


def layernorm(x, gamma, beta, eps=1e-12):
    M, H = x.shape
    tm = _pick_tile(M, (2048, 1024, 512, 256, 128))
    return pl.pallas_call(
        functools.partial(_layernorm_kernel, eps=eps),
        out_shape=jax.ShapeDtypeStruct((M, H), x.dtype),
        grid=(M // tm,),
        in_specs=[
            pl.BlockSpec((tm, H), lambda i: (i, 0)),
            pl.BlockSpec((1, H), lambda i: (0, 0)),
            pl.BlockSpec((1, H), lambda i: (0, 0)),
        ],
        out_specs=pl.BlockSpec((tm, H), lambda i: (i, 0)),
        compiler_params=pltpu.CompilerParams(dimension_semantics=("parallel",)),
    )(x, gamma.reshape(1, H), beta.reshape(1, H))


# ----------------------------- attention -----------------------------

def _attention_kernel(qkv_ref, m_ref, o_ref, *, nH, Dh, scale):
    """One batch row per grid step; all heads processed in-kernel.

    qkv_ref: (1, S, 3H) fused Q|K|V slab (bf16); m_ref: (1, 1, S) additive mask (f32);
    o_ref:   (1, S, H) lane-dense context output.

    Q/K stay bf16 into the MXU (f32 accumulate); the 1/sqrt(Dh) scale is folded into
    the bf16 Q tile; softmax normalization is deferred to the (S, Dh) context; each
    head's context is stored directly into its output column slice (no concatenate,
    bounded live ranges).
    """
    H = nH * Dh
    mask = m_ref[0]                                  # (1, S) additive, f32
    # TODO(synk): for many heads (e.g. 12) convert to lax.fori_loop over pl.ds head
    # slices; with per-head stores the static unroll is acceptable at small nH.
    for h in range(nH):
        q = qkv_ref[0, :, h * Dh:(h + 1) * Dh] * scale                   # (S, Dh) bf16
        k = qkv_ref[0, :, H + h * Dh:H + (h + 1) * Dh]                   # (S, Dh) bf16
        v = qkv_ref[0, :, 2 * H + h * Dh:2 * H + (h + 1) * Dh]           # (S, Dh) bf16
        s = jax.lax.dot_general(q, k, (((1,), (1,)), ((), ())),
                                preferred_element_type=jnp.float32)      # (S, S) f32
        s = s + mask                                 # broadcast over query rows
        p = jnp.exp(s - jnp.max(s, axis=-1, keepdims=True))              # unnormalized
        denom = jnp.sum(p, axis=-1, keepdims=True)                       # (S, 1) f32
        ctx = jnp.dot(p.astype(v.dtype), v, preferred_element_type=jnp.float32)
        ctx = ctx * pl.reciprocal(denom, approx=True)                    # (S, Dh) mul
        o_ref[0, :, h * Dh:(h + 1) * Dh] = ctx.astype(o_ref.dtype)


def attention(qkv, add_mask, *, nH, Dh, scale):
    # qkv: (B, S, 3H); add_mask: (B, 1, S) additive (0 or -1e9)
    # TODO(synk): flash-style K-tiled online softmax for long sequences (S >= 1024);
    # full (S, S) scores per head are fine at the sequence lengths used here.
    B, S, H3 = qkv.shape
    H = H3 // 3
    return pl.pallas_call(
        functools.partial(_attention_kernel, nH=nH, Dh=Dh, scale=scale),
        out_shape=jax.ShapeDtypeStruct((B, S, H), qkv.dtype),
        grid=(B,),
        in_specs=[
            pl.BlockSpec((1, S, H3), lambda b: (b, 0, 0)),
            pl.BlockSpec((1, 1, S), lambda b: (b, 0, 0)),
        ],
        out_specs=pl.BlockSpec((1, S, H), lambda b: (b, 0, 0)),
        compiler_params=pltpu.CompilerParams(dimension_semantics=("parallel",)),
    )(qkv, add_mask)


# ----------------------------- pooler + classifier (fused) -----------------------------

def _pooler_classifier_kernel(x_ref, wp_ref, bp_ref, wc_ref, bc_ref, o_ref):
    pooled = jnp.dot(x_ref[...], wp_ref[...], preferred_element_type=jnp.float32)
    pooled = jnp.tanh(pooled + bp_ref[...])
    logits = jnp.dot(pooled.astype(wc_ref.dtype), wc_ref[...],
                     preferred_element_type=jnp.float32) + bc_ref[...]
    o_ref[...] = logits.astype(o_ref.dtype)


def pooler_classifier(cls, wp, bp, wc_pad, bc_pad):
    B, H = cls.shape
    Np = wc_pad.shape[1]
    return pl.pallas_call(
        _pooler_classifier_kernel,
        out_shape=jax.ShapeDtypeStruct((B, Np), jnp.float32),
    )(cls, wp, bp.reshape(1, H), wc_pad, bc_pad.reshape(1, Np))


# ----------------------------- parameter init -----------------------------

def init_params(key, cfg):
    H = cfg["hidden"]
    I = cfg["intermediate"]
    V = cfg["vocab"]
    P = cfg["max_pos"]
    C = cfg["num_classes"]
    Cp = max(128, C)          # lane-dense classifier output; slice to C outside

    def nrm(k, shape):
        return (jax.random.normal(k, shape, dtype=jnp.float32) * 0.02).astype(jnp.bfloat16)

    keys = iter(jax.random.split(key, 8 + cfg["layers"] * 8))
    wc = nrm(next(keys), (H, C))
    params = {
        "word_emb": nrm(next(keys), (V, H)),
        "pos_emb": nrm(next(keys), (P, H)),
        "type_emb": nrm(next(keys), (2, H)),
        "emb_ln_g": jnp.ones((H,), jnp.float32),
        "emb_ln_b": jnp.zeros((H,), jnp.float32),
        "wp": nrm(next(keys), (H, H)),                       # pooler
        "bp": jnp.zeros((H,), jnp.float32),
        "wc_pad": jnp.zeros((H, Cp), jnp.bfloat16).at[:, :C].set(wc),   # classifier fc
        "bc_pad": jnp.zeros((Cp,), jnp.float32),
        "layers": [],
    }
    for _ in range(cfg["layers"]):
        lp = {
            # fused Q|K|V projection
            "wqkv": nrm(next(keys), (H, 3 * H)), "bqkv": jnp.zeros((3 * H,), jnp.float32),
            "wo": nrm(next(keys), (H, H)), "bo": jnp.zeros((H,), jnp.float32),
            "ln1_g": jnp.ones((H,), jnp.float32), "ln1_b": jnp.zeros((H,), jnp.float32),
            "wi": nrm(next(keys), (H, I)), "bi": jnp.zeros((I,), jnp.float32),
            "wo2": nrm(next(keys), (I, H)), "bo2": jnp.zeros((H,), jnp.float32),
            "ln2_g": jnp.ones((H,), jnp.float32), "ln2_b": jnp.zeros((H,), jnp.float32),
        }
        params["layers"].append(lp)
    return params


# ----------------------------- forward pass -----------------------------

def bert_classifier_forward(params, input_ids, attention_mask, cfg):
    B, S = input_ids.shape
    H = cfg["hidden"]
    nH = cfg["heads"]
    Dh = H // nH
    C = cfg["num_classes"]

    # --- embeddings (gather is glue; layernorm is a Pallas kernel) ---
    we = jnp.take(params["word_emb"], input_ids, axis=0)         # (B, S, H) bf16
    pe = params["pos_emb"][:S][None, :, :]                       # (1, S, H)
    te = params["type_emb"][0][None, None, :]                    # (1, 1, H)
    emb = (we + pe + te).reshape(B * S, H)
    hidden = layernorm(emb, params["emb_ln_g"], params["emb_ln_b"])

    # --- compact additive attention mask: (B, 1, S) of {0, -1e9}; broadcast in-kernel ---
    add_mask = ((1.0 - attention_mask.astype(jnp.float32)) * -1e9).reshape(B, 1, S)

    scale = 1.0 / math.sqrt(Dh)

    for lp in params["layers"]:
        # self-attention: fused QKV projection, head-batched attention per batch row
        qkv = linear(hidden, lp["wqkv"], lp["bqkv"])             # (B*S, 3H)
        ctx = attention(qkv.reshape(B, S, 3 * H), add_mask, nH=nH, Dh=Dh, scale=scale)
        # output projection with residual-add + LayerNorm fused into the epilogue
        hidden = linear_add_layernorm(ctx.reshape(B * S, H), lp["wo"], lp["bo"],
                                      hidden, lp["ln1_g"], lp["ln1_b"])
        # feed-forward; down-projection fuses residual-add + LayerNorm
        inter = linear(hidden, lp["wi"], lp["bi"], act="gelu")
        hidden = linear_add_layernorm(inter, lp["wo2"], lp["bo2"],
                                      hidden, lp["ln2_g"], lp["ln2_b"])

    # --- pooler(tanh) + classifier fused; output padded to 128 lanes, sliced outside ---
    cls = hidden.reshape(B, S, H)[:, 0, :]                       # (B, H)
    # Dropout is identity in eval/inference mode.
    # TODO(synk): training-mode dropout (pltpu.prng_*) not implemented.
    logits_pad = pooler_classifier(cls, params["wp"], params["bp"],
                                   params["wc_pad"], params["bc_pad"])
    return logits_pad[:, :C]                                     # (B, num_classes) f32


# ----------------------------- main -----------------------------

if __name__ == "__main__":
    cfg = dict(vocab=128, hidden=32, heads=2, layers=2,
               intermediate=64, max_pos=16, num_classes=3)
    B, S = 2, 8

    root = jax.random.PRNGKey(0)
    k_params, k_ids = jax.random.split(root)

    params = init_params(k_params, cfg)
    input_ids = jax.random.randint(k_ids, (B, S), 0, cfg["vocab"], dtype=jnp.int32)
    attention_mask = jnp.ones((B, S), dtype=jnp.int32)
    attention_mask = attention_mask.at[1, 6:].set(0)   # pad last 2 tokens of example 1

    fwd = jax.jit(functools.partial(bert_classifier_forward, cfg=cfg))
    logits = fwd(params, input_ids, attention_mask)
    jax.block_until_ready(logits)

    assert logits.shape == (B, cfg["num_classes"])
    print("KERNEL_OK")
</pallas_src>

<mosaic_0001>
module attributes {stable_mosaic.version = 11 : i64} {
  func.func @_linear_single_kernel(%arg0: i32, %arg1: i32, %arg2: memref<16x32xbf16, #tpu.memory_space<vmem>>, %arg3: memref<32x96xbf16, #tpu.memory_space<vmem>>, %arg4: memref<1x96xf32, #tpu.memory_space<vmem>>, %arg5: memref<16x96xbf16, #tpu.memory_space<vmem>>) attributes {dimension_semantics = [#tpu.dimension_semantics<parallel>, #tpu.dimension_semantics<parallel>], iteration_bounds = array<i64: 1, 1>, scalar_prefetch = 0 : i64, scratch_operands = 0 : i64, tpu.core_type = #tpu.core_type<tc>, window_params = [{transform_indices = @transform_0, window_bounds = array<i64: 16, 32>}, {transform_indices = @transform_1, window_bounds = array<i64: 32, 96>}, {transform_indices = @transform_2, window_bounds = array<i64: 1, 96>}, {transform_indices = @transform_3, window_bounds = array<i64: 16, 96>}]} {
    %c0 = arith.constant 0 : index
    %c0_0 = arith.constant 0 : index
    %0 = vector.load %arg2[%c0, %c0_0] : memref<16x32xbf16, #tpu.memory_space<vmem>>, vector<16x32xbf16>
    %c0_1 = arith.constant 0 : index
    %c0_2 = arith.constant 0 : index
    %1 = vector.load %arg3[%c0_1, %c0_2] : memref<32x96xbf16, #tpu.memory_space<vmem>>, vector<32x96xbf16>
    %cst = arith.constant dense<0.000000e+00> : vector<16x96xf32>
    %2 = tpu.matmul %0, %1, %cst {dimension_numbers = #tpu.dot_dimension_numbers<[1], [0], [0], [1], [0, 0, 1, 1], [], []>} : vector<16x32xbf16>, vector<32x96xbf16>, vector<16x96xf32> -> vector<16x96xf32>
    %c0_3 = arith.constant 0 : index
    %c0_4 = arith.constant 0 : index
    %3 = vector.load %arg4[%c0_3, %c0_4] : memref<1x96xf32, #tpu.memory_space<vmem>>, vector<1x96xf32>
    %4 = vector.broadcast %3 : vector<1x96xf32> to vector<16x96xf32>
    %5 = arith.addf %2, %4 : vector<16x96xf32>
    %6 = arith.truncf %5 : vector<16x96xf32> to vector<16x96xbf16>
    %c0_5 = arith.constant 0 : index
    %c0_6 = arith.constant 0 : index
    %7 = vector.load %arg5[%c0_5, %c0_6] : memref<16x96xbf16, #tpu.memory_space<vmem>>, vector<16x96xbf16>
    tpu.vector_store %arg5[%c0_5, %c0_6], %6 {strides = array<i32>} : memref<16x96xbf16, #tpu.memory_space<vmem>>, vector<16x96xbf16>,
    return
  }
  func.func @transform_0(%arg0: i32, %arg1: i32) -> (i32, i32) {
    %c0_i32 = arith.constant 0 : i32
    %c0_i32_0 = arith.constant 0 : i32
    return %arg0, %c0_i32 : i32, i32
  }
  func.func @transform_1(%arg0: i32, %arg1: i32) -> (i32, i32) {
    %c0_i32 = arith.constant 0 : i32
    %c0_i32_0 = arith.constant 0 : i32
    return %c0_i32, %arg1 : i32, i32
  }
  func.func @transform_2(%arg0: i32, %arg1: i32) -> (i32, i32) {
    %c0_i32 = arith.constant 0 : i32
    %c0_i32_0 = arith.constant 0 : i32
    return %c0_i32, %arg1 : i32, i32
  }
  func.func @transform_3(%arg0: i32, %arg1: i32) -> (i32, i32) {
    %c0_i32 = arith.constant 0 : i32
    return %arg0, %arg1 : i32, i32
  }
}

module attributes {stable_mosaic.version = 11 : i64} {
  func.func @_layernorm_kernel(%arg0: i32, %arg1: memref<16x32xbf16, #tpu.memory_space<vmem>>, %arg2: memref<1x32xf32, #tpu.memory_space<vmem>>, %arg3: memref<1x32xf32, #tpu.memory_space<vmem>>, %arg4: memref<16x32xbf16, #tpu.memory_space<vmem>>) attributes {dimension_semantics = [#tpu.dimension_semantics<parallel>], iteration_bounds = array<i64: 1>, scalar_prefetch = 0 : i64, scratch_operands = 0 : i64, tpu.core_type = #tpu.core_type<tc>, window_params = [{transform_indices = @transform_0, window_bounds = array<i64: 16, 32>}, {pipeline_mode = #tpu.pipeline_mode<synchronous>, transform_indices = @transform_1, window_bounds = array<i64: 1, 32>}, {pipeline_mode = #tpu.pipeline_mode<synchronous>, transform_indices = @transform_2, window_bounds = array<i64: 1, 32>}, {transform_indices = @transform_3, window_bounds = array<i64: 16, 32>}]} {
    %c0 = arith.constant 0 : index
    %c0_0 = arith.constant 0 : index
    %0 = vector.load %arg1[%c0, %c0_0] : memref<16x32xbf16, #tpu.memory_space<vmem>>, vector<16x32xbf16>
    %1 = arith.extf %0 : vector<16x32xbf16> to vector<16x32xf32>
    %cst = arith.constant dense<0.000000e+00> : vector<16xf32>
    %2 = vector.multi_reduction <add>, %1, %cst [1] : vector<16x32xf32> to vector<16xf32>
    %3 = vector.shape_cast %2 : vector<16xf32> to vector<16x1xf32>
    %cst_1 = arith.constant 3.200000e+01 : f32
    %4 = vector.broadcast %cst_1 : f32 to vector<16x1xf32>
    %5 = arith.divf %3, %4 : vector<16x1xf32>
    %6 = vector.broadcast %5 : vector<16x1xf32> to vector<16x32xf32>
    %7 = arith.subf %1, %6 : vector<16x32xf32>
    %8 = arith.mulf %7, %7 : vector<16x32xf32>
    %cst_2 = arith.constant dense<0.000000e+00> : vector<16xf32>
    %9 = vector.multi_reduction <add>, %8, %cst_2 [1] : vector<16x32xf32> to vector<16xf32>
    %10 = vector.shape_cast %9 : vector<16xf32> to vector<16x1xf32>
    %cst_3 = arith.constant 3.200000e+01 : f32
    %11 = vector.broadcast %cst_3 : f32 to vector<16x1xf32>
    %12 = arith.divf %10, %11 : vector<16x1xf32>
    %13 = vector.broadcast %5 : vector<16x1xf32> to vector<16x32xf32>
    %14 = arith.subf %1, %13 : vector<16x32xf32>
    %cst_4 = arith.constant 9.99999996E-13 : f32
    %15 = vector.broadcast %cst_4 : f32 to vector<16x1xf32>
    %16 = arith.addf %12, %15 : vector<16x1xf32>
    %17 = math.rsqrt %16 : vector<16x1xf32>
    %18 = vector.broadcast %17 : vector<16x1xf32> to vector<16x32xf32>
    %19 = arith.mulf %14, %18 : vector<16x32xf32>
    %c0_5 = arith.constant 0 : index
    %c0_6 = arith.constant 0 : index
    %20 = vector.load %arg2[%c0_5, %c0_6] : memref<1x32xf32, #tpu.memory_space<vmem>>, vector<1x32xf32>
    %21 = vector.broadcast %20 : vector<1x32xf32> to vector<16x32xf32>
    %22 = arith.mulf %19, %21 : vector<16x32xf32>
    %c0_7 = arith.constant 0 : index
    %c0_8 = arith.constant 0 : index
    %23 = vector.load %arg3[%c0_7, %c0_8] : memref<1x32xf32, #tpu.memory_space<vmem>>, vector<1x32xf32>
    %24 = vector.broadcast %23 : vector<1x32xf32> to vector<16x32xf32>
    %25 = arith.addf %22, %24 : vector<16x32xf32>
    %26 = arith.truncf %25 : vector<16x32xf32> to vector<16x32xbf16>
    %c0_9 = arith.constant 0 : index
    %c0_10 = arith.constant 0 : index
    %27 = vector.load %arg4[%c0_9, %c0_10] : memref<16x32xbf16, #tpu.memory_space<vmem>>, vector<16x32xbf16>
    tpu.vector_store %arg4[%c0_9, %c0_10], %26 {strides = array<i32>} : memref<16x32xbf16, #tpu.memory_space<vmem>>, vector<16x32xbf16>,
    return
  }
  func.func @transform_0(%arg0: i32) -> (i32, i32) {
    %c0_i32 = arith.constant 0 : i32
    %c0_i32_0 = arith.constant 0 : i32
    return %arg0, %c0_i32 : i32, i32
  }
  func.func @transform_1(%arg0: i32) -> (i32, i32) {
    %c0_i32 = arith.constant 0 : i32
    %c0_i32_0 = arith.constant 0 : i32
    %c0_i32_1 = arith.constant 0 : i32
    return %c0_i32, %c0_i32_0 : i32, i32
  }
  func.func @transform_2(%arg0: i32) -> (i32, i32) {
    %c0_i32 = arith.constant 0 : i32
    %c0_i32_0 = arith.constant 0 : i32
    %c0_i32_1 = arith.constant 0 : i32
    return %c0_i32, %c0_i32_0 : i32, i32
  }
  func.func @transform_3(%arg0: i32) -> (i32, i32) {
    %c0_i32 = arith.constant 0 : i32
    %c0_i32_0 = arith.constant 0 : i32
    return %arg0, %c0_i32 : i32, i32
  }
}

module attributes {stable_mosaic.version = 11 : i64} {
  func.func @_linear_ln_single_kernel(%arg0: i32, %arg1: memref<16x32xbf16, #tpu.memory_space<vmem>>, %arg2: memref<32x32xbf16, #tpu.memory_space<vmem>>, %arg3: memref<1x32xf32, #tpu.memory_space<vmem>>, %arg4: memref<16x32xbf16, #tpu.memory_space<vmem>>, %arg5: memref<1x32xf32, #tpu.memory_space<vmem>>, %arg6: memref<1x32xf32, #tpu.memory_space<vmem>>, %arg7: memref<16x32xbf16, #tpu.memory_space<vmem>>) attributes {dimension_semantics = [#tpu.dimension_semantics<parallel>], iteration_bounds = array<i64: 1>, scalar_prefetch = 0 : i64, scratch_operands = 0 : i64, tpu.core_type = #tpu.core_type<tc>, window_params = [{transform_indices = @transform_0, window_bounds = array<i64: 16, 32>}, {pipeline_mode = #tpu.pipeline_mode<synchronous>, transform_indices = @transform_1, window_bounds = array<i64: 32, 32>}, {pipeline_mode = #tpu.pipeline_mode<synchronous>, transform_indices = @transform_2, window_bounds = array<i64: 1, 32>}, {transform_indices = @transform_3, window_bounds = array<i64: 16, 32>}, {pipeline_mode = #tpu.pipeline_mode<synchronous>, transform_indices = @transform_4, window_bounds = array<i64: 1, 32>}, {pipeline_mode = #tpu.pipeline_mode<synchronous>, transform_indices = @transform_5, window_bounds = array<i64: 1, 32>}, {transform_indices = @transform_6, window_bounds = array<i64: 16, 32>}]} {
    %c0 = arith.constant 0 : index
    %c0_0 = arith.constant 0 : index
    %0 = vector.load %arg1[%c0, %c0_0] : memref<16x32xbf16, #tpu.memory_space<vmem>>, vector<16x32xbf16>
    %c0_1 = arith.constant 0 : index
    %c0_2 = arith.constant 0 : index
    %1 = vector.load %arg2[%c0_1, %c0_2] : memref<32x32xbf16, #tpu.memory_space<vmem>>, vector<32x32xbf16>
    %cst = arith.constant dense<0.000000e+00> : vector<16x32xf32>
    %2 = tpu.matmul %0, %1, %cst {dimension_numbers = #tpu.dot_dimension_numbers<[1], [0], [0], [1], [0, 0, 1, 1], [], []>} : vector<16x32xbf16>, vector<32x32xbf16>, vector<16x32xf32> -> vector<16x32xf32>
    %c0_3 = arith.constant 0 : index
    %c0_4 = arith.constant 0 : index
    %3 = vector.load %arg3[%c0_3, %c0_4] : memref<1x32xf32, #tpu.memory_space<vmem>>, vector<1x32xf32>
    %4 = vector.broadcast %3 : vector<1x32xf32> to vector<16x32xf32>
    %5 = arith.addf %2, %4 : vector<16x32xf32>
    %c0_5 = arith.constant 0 : index
    %c0_6 = arith.constant 0 : index
    %6 = vector.load %arg4[%c0_5, %c0_6] : memref<16x32xbf16, #tpu.memory_space<vmem>>, vector<16x32xbf16>
    %7 = arith.extf %6 : vector<16x32xbf16> to vector<16x32xf32>
    %8 = arith.addf %5, %7 : vector<16x32xf32>
    %cst_7 = arith.constant dense<0.000000e+00> : vector<16xf32>
    %9 = vector.multi_reduction <add>, %8, %cst_7 [1] : vector<16x32xf32> to vector<16xf32>
    %10 = vector.shape_cast %9 : vector<16xf32> to vector<16x1xf32>
    %cst_8 = arith.constant 3.200000e+01 : f32
    %11 = vector.broadcast %cst_8 : f32 to vector<16x1xf32>
    %12 = arith.divf %10, %11 : vector<16x1xf32>
    %13 = vector.broadcast %12 : vector<16x1xf32> to vector<16x32xf32>
    %14 = arith.subf %8, %13 : vector<16x32xf32>
    %15 = arith.mulf %14, %14 : vector<16x32xf32>
    %cst_9 = arith.constant dense<0.000000e+00> : vector<16xf32>
    %16 = vector.multi_reduction <add>, %15, %cst_9 [1] : vector<16x32xf32> to vector<16xf32>
    %17 = vector.shape_cast %16 : vector<16xf32> to vector<16x1xf32>
    %cst_10 = arith.constant 3.200000e+01 : f32
    %18 = vector.broadcast %cst_10 : f32 to vector<16x1xf32>
    %19 = arith.divf %17, %18 : vector<16x1xf32>
    %20 = vector.broadcast %12 : vector<16x1xf32> to vector<16x32xf32>
    %21 = arith.subf %8, %20 : vector<16x32xf32>
    %cst_11 = arith.constant 9.99999996E-13 : f32
    %22 = vector.broadcast %cst_11 : f32 to vector<16x1xf32>
    %23 = arith.addf %19, %22 : vector<16x1xf32>
    %24 = math.rsqrt %23 : vector<16x1xf32>
    %25 = vector.broadcast %24 : vector<16x1xf32> to vector<16x32xf32>
    %26 = arith.mulf %21, %25 : vector<16x32xf32>
    %c0_12 = arith.constant 0 : index
    %c0_13 = arith.constant 0 : index
    %27 = vector.load %arg5[%c0_12, %c0_13] : memref<1x32xf32, #tpu.memory_space<vmem>>, vector<1x32xf32>
    %28 = vector.broadcast %27 : vector<1x32xf32> to vector<16x32xf32>
    %29 = arith.mulf %26, %28 : vector<16x32xf32>
    %c0_14 = arith.constant 0 : index
    %c0_15 = arith.constant 0 : index
    %30 = vector.load %arg6[%c0_14, %c0_15] : memref<1x32xf32, #tpu.memory_space<vmem>>, vector<1x32xf32>
    %31 = vector.broadcast %30 : vector<1x32xf32> to vector<16x32xf32>
    %32 = arith.addf %29, %31 : vector<16x32xf32>
    %33 = arith.truncf %32 : vector<16x32xf32> to vector<16x32xbf16>
    %c0_16 = arith.constant 0 : index
    %c0_17 = arith.constant 0 : index
    %34 = vector.load %arg7[%c0_16, %c0_17] : memref<16x32xbf16, #tpu.memory_space<vmem>>, vector<16x32xbf16>
    tpu.vector_store %arg7[%c0_16, %c0_17], %33 {strides = array<i32>} : memref<16x32xbf16, #tpu.memory_space<vmem>>, vector<16x32xbf16>,
    return
  }
  func.func @transform_0(%arg0: i32) -> (i32, i32) {
    %c0_i32 = arith.constant 0 : i32
    %c0_i32_0 = arith.constant 0 : i32
    return %arg0, %c0_i32 : i32, i32
  }
  func.func @transform_1(%arg0: i32) -> (i32, i32) {
    %c0_i32 = arith.constant 0 : i32
    %c0_i32_0 = arith.constant 0 : i32
    %c0_i32_1 = arith.constant 0 : i32
    return %c0_i32, %c0_i32_0 : i32, i32
  }
  func.func @transform_2(%arg0: i32) -> (i32, i32) {
    %c0_i32 = arith.constant 0 : i32
    %c0_i32_0 = arith.constant 0 : i32
    %c0_i32_1 = arith.constant 0 : i32
    return %c0_i32, %c0_i32_0 : i32, i32
  }
  func.func @transform_3(%arg0: i32) -> (i32, i32) {
    %c0_i32 = arith.constant 0 : i32
    %c0_i32_0 = arith.constant 0 : i32
    return %arg0, %c0_i32 : i32, i32
  }
  func.func @transform_4(%arg0: i32) -> (i32, i32) {
    %c0_i32 = arith.constant 0 : i32
    %c0_i32_0 = arith.constant 0 : i32
    %c0_i32_1 = arith.constant 0 : i32
    return %c0_i32, %c0_i32_0 : i32, i32
  }
  func.func @transform_5(%arg0: i32) -> (i32, i32) {
    %c0_i32 = arith.constant 0 : i32
    %c0_i32_0 = arith.constant 0 : i32
    %c0_i32_1 = arith.constant 0 : i32
    return %c0_i32, %c0_i32_0 : i32, i32
  }
  func.func @transform_6(%arg0: i32) -> (i32, i32) {
    %c0_i32 = arith.constant 0 : i32
    %c0_i32_0 = arith.constant 0 : i32
    return %arg0, %c0_i32 : i32, i32
  }
}

module attributes {stable_mosaic.version = 11 : i64} {
  func.func @_attention_kernel(%arg0: i32, %arg1: memref<1x8x96xbf16, #tpu.memory_space<vmem>>, %arg2: memref<1x1x8xf32, #tpu.memory_space<vmem>>, %arg3: memref<1x8x32xbf16, #tpu.memory_space<vmem>>) attributes {dimension_semantics = [#tpu.dimension_semantics<parallel>], iteration_bounds = array<i64: 2>, scalar_prefetch = 0 : i64, scratch_operands = 0 : i64, tpu.core_type = #tpu.core_type<tc>, window_params = [{transform_indices = @transform_0, window_bounds = array<i64: 1, 8, 96>}, {transform_indices = @transform_1, window_bounds = array<i64: 1, 1, 8>}, {transform_indices = @transform_2, window_bounds = array<i64: 1, 8, 32>}]} {
    %c0 = arith.constant 0 : index
    %c0_0 = arith.constant 0 : index
    %c0_1 = arith.constant 0 : index
    %0 = vector.load %arg2[%c0, %c0_0, %c0_1] : memref<1x1x8xf32, #tpu.memory_space<vmem>>, vector<1x1x8xf32>
    %1 = vector.shape_cast %0 : vector<1x1x8xf32> to vector<1x8xf32>
    %c0_2 = arith.constant 0 : index
    %c0_3 = arith.constant 0 : index
    %c0_4 = arith.constant 0 : index
    %2 = vector.load %arg1[%c0_2, %c0_3, %c0_4] : memref<1x8x96xbf16, #tpu.memory_space<vmem>>, vector<1x8x16xbf16>
    %3 = vector.shape_cast %2 : vector<1x8x16xbf16> to vector<8x16xbf16>
    %cst = arith.constant 2.500000e-01 : bf16
    %4 = vector.broadcast %cst : bf16 to vector<8x16xbf16>
    %5 = arith.mulf %3, %4 : vector<8x16xbf16>
    %c0_5 = arith.constant 0 : index
    %c0_6 = arith.constant 0 : index
    %c32 = arith.constant 32 : index
    %6 = vector.load %arg1[%c0_5, %c0_6, %c32] : memref<1x8x96xbf16, #tpu.memory_space<vmem>>, vector<1x8x16xbf16>
    %7 = vector.shape_cast %6 : vector<1x8x16xbf16> to vector<8x16xbf16>
    %c0_7 = arith.constant 0 : index
    %c0_8 = arith.constant 0 : index
    %c64 = arith.constant 64 : index
    %8 = vector.load %arg1[%c0_7, %c0_8, %c64] : memref<1x8x96xbf16, #tpu.memory_space<vmem>>, vector<1x8x16xbf16>
    %9 = vector.shape_cast %8 : vector<1x8x16xbf16> to vector<8x16xbf16>
    %cst_9 = arith.constant dense<0.000000e+00> : vector<8x8xf32>
    %10 = tpu.matmul %5, %7, %cst_9 {dimension_numbers = #tpu.dot_dimension_numbers<[1], [1], [0], [0], [0, 0, 1, 0], [], []>} : vector<8x16xbf16>, vector<8x16xbf16>, vector<8x8xf32> -> vector<8x8xf32>
    %11 = vector.broadcast %1 : vector<1x8xf32> to vector<8x8xf32>
    %12 = arith.addf %10, %11 : vector<8x8xf32>
    %cst_10 = arith.constant dense<0xFF800000> : vector<8xf32>
    %13 = vector.multi_reduction <maximumf>, %12, %cst_10 [1] : vector<8x8xf32> to vector<8xf32>
    %14 = vector.shape_cast %13 : vector<8xf32> to vector<8x1xf32>
    %15 = vector.broadcast %14 : vector<8x1xf32> to vector<8x8xf32>
    %16 = arith.subf %12, %15 : vector<8x8xf32>
    %17 = math.exp %16 : vector<8x8xf32>
    %cst_11 = arith.constant dense<0.000000e+00> : vector<8xf32>
    %18 = vector.multi_reduction <add>, %17, %cst_11 [1] : vector<8x8xf32> to vector<8xf32>
    %19 = vector.shape_cast %18 : vector<8xf32> to vector<8x1xf32>
    %20 = arith.truncf %17 : vector<8x8xf32> to vector<8x8xbf16>
    %cst_12 = arith.constant dense<0.000000e+00> : vector<8x16xf32>
    %21 = tpu.matmul %20, %9, %cst_12 {dimension_numbers = #tpu.dot_dimension_numbers<[1], [0], [0], [1], [0, 0, 1, 1], [], []>} : vector<8x8xbf16>, vector<8x16xbf16>, vector<8x16xf32> -> vector<8x16xf32>
    %22 = tpu.reciprocal %19 {approx = true} : vector<8x1xf32> -> vector<8x1xf32>
    %23 = vector.broadcast %22 : vector<8x1xf32> to vector<8x16xf32>
    %24 = arith.mulf %21, %23 : vector<8x16xf32>
    %25 = arith.truncf %24 : vector<8x16xf32> to vector<8x16xbf16>
    %c0_13 = arith.constant 0 : index
    %c0_14 = arith.constant 0 : index
    %c0_15 = arith.constant 0 : index
    %26 = vector.load %arg3[%c0_13, %c0_14, %c0_15] : memref<1x8x32xbf16, #tpu.memory_space<vmem>>, vector<1x8x16xbf16>
    %27 = vector.shape_cast %26 : vector<1x8x16xbf16> to vector<8x16xbf16>
    %28 = vector.shape_cast %25 : vector<8x16xbf16> to vector<1x8x16xbf16>
    tpu.vector_store %arg3[%c0_13, %c0_14, %c0_15], %28 {strides = array<i32>} : memref<1x8x32xbf16, #tpu.memory_space<vmem>>, vector<1x8x16xbf16>,
    %c0_16 = arith.constant 0 : index
    %c0_17 = arith.constant 0 : index
    %c16 = arith.constant 16 : index
    %29 = vector.load %arg1[%c0_16, %c0_17, %c16] : memref<1x8x96xbf16, #tpu.memory_space<vmem>>, vector<1x8x16xbf16>
    %30 = vector.shape_cast %29 : vector<1x8x16xbf16> to vector<8x16xbf16>
    %cst_18 = arith.constant 2.500000e-01 : bf16
    %31 = vector.broadcast %cst_18 : bf16 to vector<8x16xbf16>
    %32 = arith.mulf %30, %31 : vector<8x16xbf16>
    %c0_19 = arith.constant 0 : index
    %c0_20 = arith.constant 0 : index
    %c48 = arith.constant 48 : index
    %33 = vector.load %arg1[%c0_19, %c0_20, %c48] : memref<1x8x96xbf16, #tpu.memory_space<vmem>>, vector<1x8x16xbf16>
    %34 = vector.shape_cast %33 : vector<1x8x16xbf16> to vector<8x16xbf16>
    %c0_21 = arith.constant 0 : index
    %c0_22 = arith.constant 0 : index
    %c80 = arith.constant 80 : index
    %35 = vector.load %arg1[%c0_21, %c0_22, %c80] : memref<1x8x96xbf16, #tpu.memory_space<vmem>>, vector<1x8x16xbf16>
    %36 = vector.shape_cast %35 : vector<1x8x16xbf16> to vector<8x16xbf16>
    %cst_23 = arith.constant dense<0.000000e+00> : vector<8x8xf32>
    %37 = tpu.matmul %32, %34, %cst_23 {dimension_numbers = #tpu.dot_dimension_numbers<[1], [1], [0], [0], [0, 0, 1, 0], [], []>} : vector<8x16xbf16>, vector<8x16xbf16>, vector<8x8xf32> -> vector<8x8xf32>
    %38 = vector.broadcast %1 : vector<1x8xf32> to vector<8x8xf32>
    %39 = arith.addf %37, %38 : vector<8x8xf32>
    %cst_24 = arith.constant dense<0xFF800000> : vector<8xf32>
    %40 = vector.multi_reduction <maximumf>, %39, %cst_24 [1] : vector<8x8xf32> to vector<8xf32>
    %41 = vector.shape_cast %40 : vector<8xf32> to vector<8x1xf32>
    %42 = vector.broadcast %41 : vector<8x1xf32> to vector<8x8xf32>
    %43 = arith.subf %39, %42 : vector<8x8xf32>
    %44 = math.exp %43 : vector<8x8xf32>
    %cst_25 = arith.constant dense<0.000000e+00> : vector<8xf32>
    %45 = vector.multi_reduction <add>, %44, %cst_25 [1] : vector<8x8xf32> to vector<8xf32>
    %46 = vector.shape_cast %45 : vector<8xf32> to vector<8x1xf32>
    %47 = arith.truncf %44 : vector<8x8xf32> to vector<8x8xbf16>
    %cst_26 = arith.constant dense<0.000000e+00> : vector<8x16xf32>
    %48 = tpu.matmul %47, %36, %cst_26 {dimension_numbers = #tpu.dot_dimension_numbers<[1], [0], [0], [1], [0, 0, 1, 1], [], []>} : vector<8x8xbf16>, vector<8x16xbf16>, vector<8x16xf32> -> vector<8x16xf32>
    %49 = tpu.reciprocal %46 {approx = true} : vector<8x1xf32> -> vector<8x1xf32>
    %50 = vector.broadcast %49 : vector<8x1xf32> to vector<8x16xf32>
    %51 = arith.mulf %48, %50 : vector<8x16xf32>
    %52 = arith.truncf %51 : vector<8x16xf32> to vector<8x16xbf16>
    %c0_27 = arith.constant 0 : index
    %c0_28 = arith.constant 0 : index
    %c16_29 = arith.constant 16 : index
    %53 = vector.load %arg3[%c0_27, %c0_28, %c16_29] : memref<1x8x32xbf16, #tpu.memory_space<vmem>>, vector<1x8x16xbf16>
    %54 = vector.shape_cast %53 : vector<1x8x16xbf16> to vector<8x16xbf16>
    %55 = vector.shape_cast %52 : vector<8x16xbf16> to vector<1x8x16xbf16>
    tpu.vector_store %arg3[%c0_27, %c0_28, %c16_29], %55 {strides = array<i32>} : memref<1x8x32xbf16, #tpu.memory_space<vmem>>, vector<1x8x16xbf16>,
    return
  }
  func.func @transform_0(%arg0: i32) -> (i32, i32, i32) {
    %c0_i32 = arith.constant 0 : i32
    %c0_i32_0 = arith.constant 0 : i32
    %c0_i32_1 = arith.constant 0 : i32
    return %arg0, %c0_i32, %c0_i32_0 : i32, i32, i32
  }
  func.func @transform_1(%arg0: i32) -> (i32, i32, i32) {
    %c0_i32 = arith.constant 0 : i32
    %c0_i32_0 = arith.constant 0 : i32
    %c0_i32_1 = arith.constant 0 : i32
    return %arg0, %c0_i32, %c0_i32_0 : i32, i32, i32
  }
  func.func @transform_2(%arg0: i32) -> (i32, i32, i32) {
    %c0_i32 = arith.constant 0 : i32
    %c0_i32_0 = arith.constant 0 : i32
    %c0_i32_1 = arith.constant 0 : i32
    return %arg0, %c0_i32, %c0_i32_0 : i32, i32, i32
  }
}

module attributes {stable_mosaic.version = 11 : i64} {
  func.func @_linear_single_kernel(%arg0: i32, %arg1: i32, %arg2: memref<16x32xbf16, #tpu.memory_space<vmem>>, %arg3: memref<32x64xbf16, #tpu.memory_space<vmem>>, %arg4: memref<1x64xf32, #tpu.memory_space<vmem>>, %arg5: memref<16x64xbf16, #tpu.memory_space<vmem>>) attributes {dimension_semantics = [#tpu.dimension_semantics<parallel>, #tpu.dimension_semantics<parallel>], iteration_bounds = array<i64: 1, 1>, scalar_prefetch = 0 : i64, scratch_operands = 0 : i64, tpu.core_type = #tpu.core_type<tc>, window_params = [{transform_indices = @transform_0, window_bounds = array<i64: 16, 32>}, {transform_indices = @transform_1, window_bounds = array<i64: 32, 64>}, {transform_indices = @transform_2, window_bounds = array<i64: 1, 64>}, {transform_indices = @transform_3, window_bounds = array<i64: 16, 64>}]} {
    %c0 = arith.constant 0 : index
    %c0_0 = arith.constant 0 : index
    %0 = vector.load %arg2[%c0, %c0_0] : memref<16x32xbf16, #tpu.memory_space<vmem>>, vector<16x32xbf16>
    %c0_1 = arith.constant 0 : index
    %c0_2 = arith.constant 0 : index
    %1 = vector.load %arg3[%c0_1, %c0_2] : memref<32x64xbf16, #tpu.memory_space<vmem>>, vector<32x64xbf16>
    %cst = arith.constant dense<0.000000e+00> : vector<16x64xf32>
    %2 = tpu.matmul %0, %1, %cst {dimension_numbers = #tpu.dot_dimension_numbers<[1], [0], [0], [1], [0, 0, 1, 1], [], []>} : vector<16x32xbf16>, vector<32x64xbf16>, vector<16x64xf32> -> vector<16x64xf32>
    %c0_3 = arith.constant 0 : index
    %c0_4 = arith.constant 0 : index
    %3 = vector.load %arg4[%c0_3, %c0_4] : memref<1x64xf32, #tpu.memory_space<vmem>>, vector<1x64xf32>
    %4 = vector.broadcast %3 : vector<1x64xf32> to vector<16x64xf32>
    %5 = arith.addf %2, %4 : vector<16x64xf32>
    %cst_5 = arith.constant 5.000000e-01 : f32
    %6 = vector.broadcast %cst_5 : f32 to vector<16x64xf32>
    %7 = arith.mulf %6, %5 : vector<16x64xf32>
    %cst_6 = arith.constant 4.471500e-02 : f32
    %8 = vector.broadcast %cst_6 : f32 to vector<16x64xf32>
    %9 = arith.mulf %8, %5 : vector<16x64xf32>
    %10 = arith.mulf %9, %5 : vector<16x64xf32>
    %11 = arith.mulf %10, %5 : vector<16x64xf32>
    %12 = arith.addf %5, %11 : vector<16x64xf32>
    %cst_7 = arith.constant 0.797884583 : f32
    %13 = vector.broadcast %cst_7 : f32 to vector<16x64xf32>
    %14 = arith.mulf %13, %12 : vector<16x64xf32>
    %15 = math.tanh %14 : vector<16x64xf32>
    %cst_8 = arith.constant 1.000000e+00 : f32
    %16 = vector.broadcast %cst_8 : f32 to vector<16x64xf32>
    %17 = arith.addf %16, %15 : vector<16x64xf32>
    %18 = arith.mulf %7, %17 : vector<16x64xf32>
    %19 = arith.truncf %18 : vector<16x64xf32> to vector<16x64xbf16>
    %c0_9 = arith.constant 0 : index
    %c0_10 = arith.constant 0 : index
    %20 = vector.load %arg5[%c0_9, %c0_10] : memref<16x64xbf16, #tpu.memory_space<vmem>>, vector<16x64xbf16>
    tpu.vector_store %arg5[%c0_9, %c0_10], %19 {strides = array<i32>} : memref<16x64xbf16, #tpu.memory_space<vmem>>, vector<16x64xbf16>,
    return
  }
  func.func @transform_0(%arg0: i32, %arg1: i32) -> (i32, i32) {
    %c0_i32 = arith.constant 0 : i32
    %c0_i32_0 = arith.constant 0 : i32
    return %arg0, %c0_i32 : i32, i32
  }
  func.func @transform_1(%arg0: i32, %arg1: i32) -> (i32, i32) {
    %c0_i32 = arith.constant 0 : i32
    %c0_i32_0 = arith.constant 0 : i32
    return %c0_i32, %arg1 : i32, i32
  }
  func.func @transform_2(%arg0: i32, %arg1: i32) -> (i32, i32) {
    %c0_i32 = arith.constant 0 : i32
    %c0_i32_0 = arith.constant 0 : i32
    return %c0_i32, %arg1 : i32, i32
  }
  func.func @transform_3(%arg0: i32, %arg1: i32) -> (i32, i32) {
    %c0_i32 = arith.constant 0 : i32
    return %arg0, %arg1 : i32, i32
  }
}

module attributes {stable_mosaic.version = 11 : i64} {
  func.func @_linear_ln_single_kernel(%arg0: i32, %arg1: memref<16x64xbf16, #tpu.memory_space<vmem>>, %arg2: memref<64x32xbf16, #tpu.memory_space<vmem>>, %arg3: memref<1x32xf32, #tpu.memory_space<vmem>>, %arg4: memref<16x32xbf16, #tpu.memory_space<vmem>>, %arg5: memref<1x32xf32, #tpu.memory_space<vmem>>, %arg6: memref<1x32xf32, #tpu.memory_space<vmem>>, %arg7: memref<16x32xbf16, #tpu.memory_space<vmem>>) attributes {dimension_semantics = [#tpu.dimension_semantics<parallel>], iteration_bounds = array<i64: 1>, scalar_prefetch = 0 : i64, scratch_operands = 0 : i64, tpu.core_type = #tpu.core_type<tc>, window_params = [{transform_indices = @transform_0, window_bounds = array<i64: 16, 64>}, {pipeline_mode = #tpu.pipeline_mode<synchronous>, transform_indices = @transform_1, window_bounds = array<i64: 64, 32>}, {pipeline_mode = #tpu.pipeline_mode<synchronous>, transform_indices = @transform_2, window_bounds = array<i64: 1, 32>}, {transform_indices = @transform_3, window_bounds = array<i64: 16, 32>}, {pipeline_mode = #tpu.pipeline_mode<synchronous>, transform_indices = @transform_4, window_bounds = array<i64: 1, 32>}, {pipeline_mode = #tpu.pipeline_mode<synchronous>, transform_indices = @transform_5, window_bounds = array<i64: 1, 32>}, {transform_indices = @transform_6, window_bounds = array<i64: 16, 32>}]} {
    %c0 = arith.constant 0 : index
    %c0_0 = arith.constant 0 : index
    %0 = vector.load %arg1[%c0, %c0_0] : memref<16x64xbf16, #tpu.memory_space<vmem>>, vector<16x64xbf16>
    %c0_1 = arith.constant 0 : index
    %c0_2 = arith.constant 0 : index
    %1 = vector.load %arg2[%c0_1, %c0_2] : memref<64x32xbf16, #tpu.memory_space<vmem>>, vector<64x32xbf16>
    %cst = arith.constant dense<0.000000e+00> : vector<16x32xf32>
    %2 = tpu.matmul %0, %1, %cst {dimension_numbers = #tpu.dot_dimension_numbers<[1], [0], [0], [1], [0, 0, 1, 1], [], []>} : vector<16x64xbf16>, vector<64x32xbf16>, vector<16x32xf32> -> vector<16x32xf32>
    %c0_3 = arith.constant 0 : index
    %c0_4 = arith.constant 0 : index
    %3 = vector.load %arg3[%c0_3, %c0_4] : memref<1x32xf32, #tpu.memory_space<vmem>>, vector<1x32xf32>
    %4 = vector.broadcast %3 : vector<1x32xf32> to vector<16x32xf32>
    %5 = arith.addf %2, %4 : vector<16x32xf32>
    %c0_5 = arith.constant 0 : index
    %c0_6 = arith.constant 0 : index
    %6 = vector.load %arg4[%c0_5, %c0_6] : memref<16x32xbf16, #tpu.memory_space<vmem>>, vector<16x32xbf16>
    %7 = arith.extf %6 : vector<16x32xbf16> to vector<16x32xf32>
    %8 = arith.addf %5, %7 : vector<16x32xf32>
    %cst_7 = arith.constant dense<0.000000e+00> : vector<16xf32>
    %9 = vector.multi_reduction <add>, %8, %cst_7 [1] : vector<16x32xf32> to vector<16xf32>
    %10 = vector.shape_cast %9 : vector<16xf32> to vector<16x1xf32>
    %cst_8 = arith.constant 3.200000e+01 : f32
    %11 = vector.broadcast %cst_8 : f32 to vector<16x1xf32>
    %12 = arith.divf %10, %11 : vector<16x1xf32>
    %13 = vector.broadcast %12 : vector<16x1xf32> to vector<16x32xf32>
    %14 = arith.subf %8, %13 : vector<16x32xf32>
    %15 = arith.mulf %14, %14 : vector<16x32xf32>
    %cst_9 = arith.constant dense<0.000000e+00> : vector<16xf32>
    %16 = vector.multi_reduction <add>, %15, %cst_9 [1] : vector<16x32xf32> to vector<16xf32>
    %17 = vector.shape_cast %16 : vector<16xf32> to vector<16x1xf32>
    %cst_10 = arith.constant 3.200000e+01 : f32
    %18 = vector.broadcast %cst_10 : f32 to vector<16x1xf32>
    %19 = arith.divf %17, %18 : vector<16x1xf32>
    %20 = vector.broadcast %12 : vector<16x1xf32> to vector<16x32xf32>
    %21 = arith.subf %8, %20 : vector<16x32xf32>
    %cst_11 = arith.constant 9.99999996E-13 : f32
    %22 = vector.broadcast %cst_11 : f32 to vector<16x1xf32>
    %23 = arith.addf %19, %22 : vector<16x1xf32>
    %24 = math.rsqrt %23 : vector<16x1xf32>
    %25 = vector.broadcast %24 : vector<16x1xf32> to vector<16x32xf32>
    %26 = arith.mulf %21, %25 : vector<16x32xf32>
    %c0_12 = arith.constant 0 : index
    %c0_13 = arith.constant 0 : index
    %27 = vector.load %arg5[%c0_12, %c0_13] : memref<1x32xf32, #tpu.memory_space<vmem>>, vector<1x32xf32>
    %28 = vector.broadcast %27 : vector<1x32xf32> to vector<16x32xf32>
    %29 = arith.mulf %26, %28 : vector<16x32xf32>
    %c0_14 = arith.constant 0 : index
    %c0_15 = arith.constant 0 : index
    %30 = vector.load %arg6[%c0_14, %c0_15] : memref<1x32xf32, #tpu.memory_space<vmem>>, vector<1x32xf32>
    %31 = vector.broadcast %30 : vector<1x32xf32> to vector<16x32xf32>
    %32 = arith.addf %29, %31 : vector<16x32xf32>
    %33 = arith.truncf %32 : vector<16x32xf32> to vector<16x32xbf16>
    %c0_16 = arith.constant 0 : index
    %c0_17 = arith.constant 0 : index
    %34 = vector.load %arg7[%c0_16, %c0_17] : memref<16x32xbf16, #tpu.memory_space<vmem>>, vector<16x32xbf16>
    tpu.vector_store %arg7[%c0_16, %c0_17], %33 {strides = array<i32>} : memref<16x32xbf16, #tpu.memory_space<vmem>>, vector<16x32xbf16>,
    return
  }
  func.func @transform_0(%arg0: i32) -> (i32, i32) {
    %c0_i32 = arith.constant 0 : i32
    %c0_i32_0 = arith.constant 0 : i32
    return %arg0, %c0_i32 : i32, i32
  }
  func.func @transform_1(%arg0: i32) -> (i32, i32) {
    %c0_i32 = arith.constant 0 : i32
    %c0_i32_0 = arith.constant 0 : i32
    %c0_i32_1 = arith.constant 0 : i32
    return %c0_i32, %c0_i32_0 : i32, i32
  }
  func.func @transform_2(%arg0: i32) -> (i32, i32) {
    %c0_i32 = arith.constant 0 : i32
    %c0_i32_0 = arith.constant 0 : i32
    %c0_i32_1 = arith.constant 0 : i32
    return %c0_i32, %c0_i32_0 : i32, i32
  }
  func.func @transform_3(%arg0: i32) -> (i32, i32) {
    %c0_i32 = arith.constant 0 : i32
    %c0_i32_0 = arith.constant 0 : i32
    return %arg0, %c0_i32 : i32, i32
  }
  func.func @transform_4(%arg0: i32) -> (i32, i32) {
    %c0_i32 = arith.constant 0 : i32
    %c0_i32_0 = arith.constant 0 : i32
    %c0_i32_1 = arith.constant 0 : i32
    return %c0_i32, %c0_i32_0 : i32, i32
  }
  func.func @transform_5(%arg0: i32) -> (i32, i32) {
    %c0_i32 = arith.constant 0 : i32
    %c0_i32_0 = arith.constant 0 : i32
    %c0_i32_1 = arith.constant 0 : i32
    return %c0_i32, %c0_i32_0 : i32, i32
  }
  func.func @transform_6(%arg0: i32) -> (i32, i32) {
    %c0_i32 = arith.constant 0 : i32
    %c0_i32_0 = arith.constant 0 : i32
    return %arg0, %c0_i32 : i32, i32
  }
}

module attributes {stable_mosaic.version = 11 : i64} {
  func.func @_pooler_classifier_kernel(%arg0: memref<2x32xbf16, #tpu.memory_space<vmem>>, %arg1: memref<32x32xbf16, #tpu.memory_space<vmem>>, %arg2: memref<1x32xf32, #tpu.memory_space<vmem>>, %arg3: memref<32x128xbf16, #tpu.memory_space<vmem>>, %arg4: memref<1x128xf32, #tpu.memory_space<vmem>>, %arg5: memref<2x128xf32, #tpu.memory_space<vmem>>) attributes {dimension_semantics = [], scalar_prefetch = 0 : i64, scratch_operands = 0 : i64, tpu.core_type = #tpu.core_type<tc>} {
    %c0 = arith.constant 0 : index
    %c0_0 = arith.constant 0 : index
    %0 = vector.load %arg0[%c0, %c0_0] : memref<2x32xbf16, #tpu.memory_space<vmem>>, vector<2x32xbf16>
    %c0_1 = arith.constant 0 : index
    %c0_2 = arith.constant 0 : index
    %1 = vector.load %arg1[%c0_1, %c0_2] : memref<32x32xbf16, #tpu.memory_space<vmem>>, vector<32x32xbf16>
    %cst = arith.constant dense<0.000000e+00> : vector<2x32xf32>
    %2 = tpu.matmul %0, %1, %cst {dimension_numbers = #tpu.dot_dimension_numbers<[1], [0], [0], [1], [0, 0, 1, 1], [], []>} : vector<2x32xbf16>, vector<32x32xbf16>, vector<2x32xf32> -> vector<2x32xf32>
    %c0_3 = arith.constant 0 : index
    %c0_4 = arith.constant 0 : index
    %3 = vector.load %arg2[%c0_3, %c0_4] : memref<1x32xf32, #tpu.memory_space<vmem>>, vector<1x32xf32>
    %4 = vector.broadcast %3 : vector<1x32xf32> to vector<2x32xf32>
    %5 = arith.addf %2, %4 : vector<2x32xf32>
    %6 = math.tanh %5 : vector<2x32xf32>
    %7 = arith.truncf %6 : vector<2x32xf32> to vector<2x32xbf16>
    %c0_5 = arith.constant 0 : index
    %c0_6 = arith.constant 0 : index
    %8 = vector.load %arg3[%c0_5, %c0_6] : memref<32x128xbf16, #tpu.memory_space<vmem>>, vector<32x128xbf16>
    %cst_7 = arith.constant dense<0.000000e+00> : vector<2x128xf32>
    %9 = tpu.matmul %7, %8, %cst_7 {dimension_numbers = #tpu.dot_dimension_numbers<[1], [0], [0], [1], [0, 0, 1, 1], [], []>} : vector<2x32xbf16>, vector<32x128xbf16>, vector<2x128xf32> -> vector<2x128xf32>
    %c0_8 = arith.constant 0 : index
    %c0_9 = arith.constant 0 : index
    %10 = vector.load %arg4[%c0_8, %c0_9] : memref<1x128xf32, #tpu.memory_space<vmem>>, vector<1x128xf32>
    %11 = vector.broadcast %10 : vector<1x128xf32> to vector<2x128xf32>
    %12 = arith.addf %9, %11 : vector<2x128xf32>
    %c0_10 = arith.constant 0 : index
    %c0_11 = arith.constant 0 : index
    %13 = vector.load %arg5[%c0_10, %c0_11] : memref<2x128xf32, #tpu.memory_space<vmem>>, vector<2x128xf32>
    tpu.vector_store %arg5[%c0_10, %c0_11], %12 {strides = array<i32>} : memref<2x128xf32, #tpu.memory_space<vmem>>, vector<2x128xf32>,
    return
  }
}

</mosaic_0001>

<bundles_post_ra>
// kernel: bert_classifier_forward.13
= control target key start
LH: loop header
LB: loop body
LE: loop exit
PB: predicated region body
PF: predicated region fallthrough
CT: control target
= control target key end

     0   :  { %v130_v0 = vmov 0.0   ;;  %vm131_vm0 = vmmov 0   ;;  %vm45_vm1 = vcmask 261120   ;;  %vm98_vm2 = vcmask 781312   ;;  %s170_s1 = inlined_call_operand.vmem [shape: bf16[32,96], index: 1, kind: input, shape index: {}]   ;;  %s171_s0 = inlined_call_operand.vmem [shape: bf16[16,32], index: 0, kind: input, shape index: {}]   ;;  %s172_s2 = inlined_call_operand.vmem [shape: f32[1,96], index: 2, kind: input, shape index: {}]   ;;  %s173_s3 = inlined_call_operand.vmem [shape: bf16[16,96], index: 3, kind: output, shape index: {}]  }
   0x1   :  { %117 = vmatprep.subr.bf16.mxu0 %v130_v0  ;;  %v127_v1 = vld [vmem:[%s170_s1 + $0x8] sm:$0xff]   ;;  %121 = vmatprep.mubr.msk.bf16.mxu0 %vm131_vm0, %v130_v0  ;;  %v128_v2 = vld [vmem:[%s170_s1] sm:$0xff]  }
   0x2   :  { %118 = vmatpush3.bf16.msra.mxu0 %v127_v1  ;;  %v129_v3 = vld [vmem:[%s171_s0] sm:$0xff]  }
   0x3   :  { %119 = vmatprep.subr.bf16.mxu0 %v130_v0  ;;  %v105_v4 = vld [vmem:[%s172_s2] ss:$0 sm:$0xff] }
   0x6   :  { %120 = vmatpush3.bf16.msra.mxu0 %v128_v2 }
   0x9   :  { %122 = vmatmul.mubr.msk.bf16.vlgmr.msra.gmra.mxu0 %vm45_vm1, %v129_v3 }
  0xc9   :  { %v83_v5 = vpop.f32.mrf.mxu0 }
  0xca   :  { %v84_v6 = vadd.f32 %v105_v4, %v83_v5 }
  0xcb   :  { %v123_v7 = vpop.f32.mrf.mxu0 }
  0xcc   :  { %v112_v8 = vpack.c.bf16 %v84_v6, %v84_v6 }
  0xcd   :  { %v86_v9 = vpop.f32.mrf.mxu0 }
  0xce   :  { %99 = vst.msk [vmem:[%s173_s3] sm:$0xf] %vm98_vm2, %v112_v8  ;;  %v87_v10 = vadd.f32 %v105_v4, %v86_v9 }
  0xcf   :  { %v124_v11 = vpop.f32.mrf.mxu0 }
  0xd0   :  { %v113_v12 = vpack.c.bf16 %v87_v10, %v87_v10 }
  0xd2   :  { %100 = vst.msk [vmem:[%s173_s3 + $0x4] sm:$0xf] %vm98_vm2, %v113_v12 }

// kernel: bert_classifier_forward.12
= control target key start
LH: loop header
LB: loop body
LE: loop exit
PB: predicated region body
PF: predicated region fallthrough
CT: control target
= control target key end

     0   :  { %vm18_vm0 = vcmask 261120   ;;  %vm72_vm1 = vcmask 257024   ;;  %s132_s0 = inlined_call_operand.vmem [shape: bf16[16,32], index: 0, kind: input, shape index: {}]   ;;  %s133_s1 = inlined_call_operand.vmem [shape: f32[1,32], index: 1, kind: input, shape index: {}]   ;;  %s134_s2 = inlined_call_operand.vmem [shape: f32[1,32], index: 2, kind: input, shape index: {}]   ;;  %s135_s3 = inlined_call_operand.vmem [shape: bf16[16,32], index: 3, kind: output, shape index: {}]  }
   0x1   :  { %v86_v0 = vld [vmem:[%s132_s0] sm:$0xff]  }
   0x2   :  { %v87_v1 = vunpack.c.l.bf16 %v86_v0  ;;  %v88_v2 = vunpack.c.h.bf16 %v86_v0  ;;  %v79_v22 = vld [vmem:[%s133_s1] ss:$0 sm:$0xff] }
   0x3   :  { %v80_v24 = vld [vmem:[%s134_s2] ss:$0 sm:$0xff] }
   0x4   :  { %v19_v3 = vsel %vm18_vm0, %v87_v1, 0.0  ;;  %v22_v4 = vsel %vm18_vm0, %v88_v2, 0.0 }
   0x5   :  { %20 = vadd.xlane.f32.xlu0 %v19_v3 }
   0x9   :  { %23 = vadd.xlane.f32.xlu0 %v22_v4 }
  0x8e   :  { %v21_v5 = vpop.xlane.xlu0 %20 }
  0x8f   :  { %v26_v6 = vmul.f32 0.03125, %v21_v5 }
  0x91   :  { %v28_v7 = vsub.f32 %v87_v1, %v26_v6 }
  0x92   :  { %v24_v8 = vpop.xlane.xlu0 %23 }
  0x93   :  { %v27_v9 = vmul.f32 0.03125, %v24_v8  ;;  %v30_v10 = vmul.f32 %v28_v7, %v28_v7 }
  0x95   :  { %v29_v11 = vsub.f32 %v88_v2, %v27_v9  ;;  %v32_v12 = vsel %vm18_vm0, %v30_v10, 0.0 }
  0x96   :  { %33 = vadd.xlane.f32.xlu1 %v32_v12 }
  0x97   :  { %v31_v13 = vmul.f32 %v29_v11, %v29_v11 }
  0x99   :  { %v35_v14 = vsel %vm18_vm0, %v31_v13, 0.0 }
  0x9a   :  { %36 = vadd.xlane.f32.xlu1 %v35_v14 }
 0x11f   :  { %v34_v15 = vpop.xlane.xlu1 %33 }
 0x120   :  { %v38_v16 = vmul.f32 0.03125, %v34_v15 }
 0x122   :  { %v40_v17 = vadd.f32 1e-12, %v38_v16 }
 0x123   :  { %v37_v18 = vpop.xlane.xlu1 %36 }
 0x124   :  { %89 = vrsqrt.f32 %v40_v17  ;;  %v39_v19 = vmul.f32 0.03125, %v37_v18 }
 0x126   :  { %v41_v20 = vadd.f32 1e-12, %v39_v19 }
 0x128   :  { %91 = vrsqrt.f32 %v41_v20 }
 0x131   :  { %v90_v21 = vpop.eup %89 }
 0x132   :  { %v44_v23 = vmul.f32 %v90_v21, %v28_v7 }
 0x134   :  { %v53_v25 = vmul.f32 %v79_v22, %v44_v23 }
 0x135   :  { %v92_v26 = vpop.eup %91 }
 0x136   :  { %v62_v27 = vadd.f32 %v80_v24, %v53_v25  ;;  %v45_v28 = vmul.f32 %v92_v26, %v29_v11 }
 0x138   :  { %v83_v29 = vpack.c.bf16 %v62_v27, %v62_v27  ;;  %v54_v30 = vmul.f32 %v79_v22, %v45_v28 }
 0x13a   :  { %73 = vst.msk [vmem:[%s135_s3] sm:$0xf] %vm72_vm1, %v83_v29  ;;  %v63_v31 = vadd.f32 %v80_v24, %v54_v30 }
 0x13c   :  { %v84_v32 = vpack.c.bf16 %v63_v31, %v63_v31 }
 0x13e   :  { %74 = vst.msk [vmem:[%s135_s3 + $0x4] sm:$0xf] %vm72_vm1, %v84_v32 }

// kernel: bert_classifier_forward.15
= control target key start
LH: loop header
LB: loop body
LE: loop exit
PB: predicated region body
PF: predicated region fallthrough
CT: control target
= control target key end

     0   :  { %v200_v0 = vmov 0.0   ;;  %vm201_vm0 = vmmov 0   ;;  %vm54_vm1 = vcmask 261120   ;;  %vm158_vm2 = vcmask 257024   ;;  %s269_s1 = inlined_call_operand.vmem [shape: bf16[32,32], index: 1, kind: input, shape index: {}]   ;;  %s270_s0 = inlined_call_operand.vmem [shape: bf16[16,32], index: 0, kind: input, shape index: {}]   ;;  %s271_s3 = inlined_call_operand.vmem [shape: bf16[16,32], index: 3, kind: input, shape index: {}]   ;;  %s272_s2 = inlined_call_operand.vmem [shape: f32[1,32], index: 2, kind: input, shape index: {}]   ;;  %s273_s4 = inlined_call_operand.vmem [shape: f32[1,32], index: 4, kind: input, shape index: {}]   ;;  %s274_s5 = inlined_call_operand.vmem [shape: f32[1,32], index: 5, kind: input, shape index: {}]   ;;  %s275_s6 = inlined_call_operand.vmem [shape: bf16[16,32], index: 6, kind: output, shape index: {}]  }
   0x1   :  { %183 = vmatprep.subr.bf16.mxu0 %v200_v0  ;;  %v193_v1 = vld [vmem:[%s269_s1 + $0x8] sm:$0xff]   ;;  %187 = vmatprep.mubr.msk.bf16.mxu0 %vm201_vm0, %v200_v0  ;;  %v194_v2 = vld [vmem:[%s269_s1] sm:$0xff]  }
   0x2   :  { %184 = vmatpush3.bf16.msra.mxu0 %v193_v1  ;;  %v195_v3 = vld [vmem:[%s270_s0] sm:$0xff]  }
   0x3   :  { %185 = vmatprep.subr.bf16.mxu0 %v200_v0  ;;  %v177_v4 = vld [vmem:[%s271_s3] sm:$0xff]  }
   0x4   :  { %v165_v5 = vld [vmem:[%s272_s2] ss:$0 sm:$0xff]  ;;  %v178_v6 = vunpack.c.l.bf16 %v177_v4  ;;  %v179_v11 = vunpack.c.h.bf16 %v177_v4 }
   0x5   :  { %v170_v35 = vld [vmem:[%s273_s4] ss:$0 sm:$0xff] }
   0x6   :  { %186 = vmatpush3.bf16.msra.mxu0 %v194_v2  ;;  %v171_v37 = vld [vmem:[%s274_s5] ss:$0 sm:$0xff] }
   0x9   :  { %188 = vmatmul.mubr.msk.bf16.vlgmr.msra.gmra.mxu0 %vm54_vm1, %v195_v3 }
  0xc9   :  { %v92_v7 = vpop.f32.mrf.mxu0 }
  0xca   :  { %v93_v8 = vadd.f32 %v165_v5, %v92_v7 }
  0xcb   :  { %v189_v9 = vpop.f32.mrf.mxu0 }
  0xcc   :  { %v103_v10 = vadd.f32 %v178_v6, %v93_v8 }
  0xcd   :  { %v95_v12 = vpop.f32.mrf.mxu0 }
  0xce   :  { %v96_v13 = vadd.f32 %v165_v5, %v95_v12  ;;  %v105_v14 = vsel %vm54_vm1, %v103_v10, 0.0 }
  0xcf   :  { %106 = vadd.xlane.f32.xlu0 %v105_v14  ;;  %v190_v15 = vpop.f32.mrf.mxu0 }
  0xd0   :  { %v104_v16 = vadd.f32 %v179_v11, %v96_v13 }
  0xd2   :  { %v108_v17 = vsel %vm54_vm1, %v104_v16, 0.0 }
  0xd3   :  { %109 = vadd.xlane.f32.xlu0 %v108_v17 }
 0x158   :  { %v107_v18 = vpop.xlane.xlu0 %106 }
 0x159   :  { %v112_v19 = vmul.f32 0.03125, %v107_v18 }
 0x15b   :  { %v114_v20 = vsub.f32 %v103_v10, %v112_v19 }
 0x15c   :  { %v110_v21 = vpop.xlane.xlu0 %109 }
 0x15d   :  { %v113_v22 = vmul.f32 0.03125, %v110_v21  ;;  %v116_v23 = vmul.f32 %v114_v20, %v114_v20 }
 0x15f   :  { %v115_v24 = vsub.f32 %v104_v16, %v113_v22  ;;  %v118_v25 = vsel %vm54_vm1, %v116_v23, 0.0 }
 0x160   :  { %119 = vadd.xlane.f32.xlu1 %v118_v25 }
 0x161   :  { %v117_v26 = vmul.f32 %v115_v24, %v115_v24 }
 0x163   :  { %v121_v27 = vsel %vm54_vm1, %v117_v26, 0.0 }
 0x164   :  { %122 = vadd.xlane.f32.xlu1 %v121_v27 }
 0x1e9   :  { %v120_v28 = vpop.xlane.xlu1 %119 }
 0x1ea   :  { %v124_v29 = vmul.f32 0.03125, %v120_v28 }
 0x1ec   :  { %v126_v30 = vadd.f32 1e-12, %v124_v29 }
 0x1ed   :  { %v123_v31 = vpop.xlane.xlu1 %122 }
 0x1ee   :  { %196 = vrsqrt.f32 %v126_v30  ;;  %v125_v32 = vmul.f32 0.03125, %v123_v31 }
 0x1f0   :  { %v127_v33 = vadd.f32 1e-12, %v125_v32 }
 0x1f2   :  { %198 = vrsqrt.f32 %v127_v33 }
 0x1fb   :  { %v197_v34 = vpop.eup %196 }
 0x1fc   :  { %v130_v36 = vmul.f32 %v197_v34, %v114_v20 }
 0x1fe   :  { %v139_v38 = vmul.f32 %v170_v35, %v130_v36 }
 0x1ff   :  { %v199_v39 = vpop.eup %198 }
 0x200   :  { %v148_v40 = vadd.f32 %v171_v37, %v139_v38  ;;  %v131_v41 = vmul.f32 %v199_v39, %v115_v24 }
 0x202   :  { %v174_v42 = vpack.c.bf16 %v148_v40, %v148_v40  ;;  %v140_v43 = vmul.f32 %v170_v35, %v131_v41 }
 0x204   :  { %159 = vst.msk [vmem:[%s275_s6] sm:$0xf] %vm158_vm2, %v174_v42  ;;  %v149_v44 = vadd.f32 %v171_v37, %v140_v43 }
 0x206   :  { %v175_v45 = vpack.c.bf16 %v149_v44, %v149_v44 }
 0x208   :  { %160 = vst.msk [vmem:[%s275_s6 + $0x4] sm:$0xf] %vm158_vm2, %v175_v45 }

// kernel: bert_classifier_forward.14
= control target key start
LH: loop header
LB: loop body
LE: loop exit
PB: predicated region body
PF: predicated region fallthrough
CT: control target
= control target key end

     0   :  { %s578_s9 = smov 0   ;;  %s622_s0 = inlined_call_operand.vmem [shape: bf16[2,8,96], index: 0, kind: input, shape index: {}]   ;;  %s623_s1 = inlined_call_operand.vmem [shape: f32[2,1,8], index: 1, kind: input, shape index: {}]   ;;  %s624_s2 = inlined_call_operand.vmem [shape: bf16[2,8,32], index: 2, kind: output, shape index: {}]  }
   0x1 LB: > { %s470_s10 = sadd.s32 4294967295, %s553_s9   ;;  %p474_p0 = scmp.ge.s32.totalorder %s553_s9, 1  ;;  %s553_s9 = sphi %s578_s9, %s12_s9  }
   0x2   : > { %p119_p1 = scmp.lt.s32.totalorder %s553_s9, 3 }
   0x4   : > { %p120_p2 = pnand %p474_p0, %p119_p1 }
   0x5   : > { %p142_p3 = scmp.lt.s32.totalorder (!%p120_p2), %s470_s10, 1  ;;  %s557_s15 = smov (!%p120_p2), 96  }
   0x6   : > { %123 = sbr.rel (%p120_p2) target bundleno = 1169 (0x491), region = 28  ;;  %s558_s16 = smov (!%p120_p2), 64  }
   0x7   : > { %s559_s17 = smov (!%p120_p2), 80   ;;  %s560_s18 = smov (!%p120_p2), 112  }
   0x8   : > { %s561_s22 = smov (!%p120_p2), 48   ;;  %s562_s26 = smov (!%p120_p2), 16  }
   0xb   : > { %v555_v0 = vmov 0.0   ;;  %vm556_vm0 = vmmov 0   ;;  %s626_s10 = smov (!%p142_p3, %s470_s10), 1  ;;  %vm169_vm1 = vcmask 130048   ;;  %vm216_vm2 = vcmask 64512  }
   0xc   : > { %497 = vmatprep.subr.bf16.mxu0 %v555_v0  ;;  %499 = vmatprep.mubr.msk.bf16.mxu0 %vm556_vm0, %v555_v0  ;;  %s475_s11 = sshll.u32 %s626_s10, 2  ;;  %s148_s21 = scalar_lea.vmem %s623_s1, %s626_s10  ;;  %vm232_vm3 = vcmask 1043456   ;;  %vm279_vm4 = vcmask 125952   ;;  %vm406_vm5 = vcmask 257152  }
   0xd   : > { %503 = vmatprep.subr.bf16.mxu1 %v555_v0  ;;  %505 = vmatprep.mubr.msk.bf16.mxu1 %vm556_vm0, %v555_v0  ;;  %s145_s14 = scalar_lea.vmem %s622_s0, %s475_s11  ;;  %v477_v10 = vld [vmem:[%s148_s21] ss:$0 sm:$0xff]  ;;  %s152_s25 = scalar_lea.vmem %s624_s2, %s475_s11 }
   0xe   : > { %v156_v1 = vld [vmem:[%s145_s14] sm:$0xf] }
   0xf   : > { %v478_v2 = vcombine.low %v156_v1, %v156_v1  ;;  %v157_v5 = vmul.bf16 1048592000, %v156_v1  ;;  %v281_v6 = vld [vmem:[%s145_s14] sm:$0xf] }
  0x10   : > { %v482_v7 = vcombine.low %v281_v6, %v281_v6  ;;  %v282_v8 = vmul.bf16 1048592000, %v281_v6 }
  0x11   : > { %167 = vrot.lane.b32.xlu0 %v478_v2, %s557_s15  ;;  %227 = vrot.lane.b32.xlu1 %v478_v2, %s558_s16 }
  0x12   : > { %v481_v9 = vcombine.low %v282_v8, %v282_v8 }
  0x15   : > { %291 = vrot.lane.b32.xlu1 %v482_v7, %s559_s17 }
  0x19   : > { %286 = vrot.lane.b32.xlu1 %v481_v9, %s560_s18 }
  0x83   : > { %v168_v3 = vpop.permute.xlu0 %167  ;;  %v228_v17 = vpop.permute.xlu1 %227 }
  0x84   : > { %v174_v4 = vsel %vm169_vm1, %v168_v3, 0  ;;  %v234_v18 = vsel %vm232_vm3, %v228_v17, 0 }
  0x85   : > { %498 = vmatpush3.bf16.xpose.msra.mxu0 %v174_v4  ;;  %504 = vmatpush3.bf16.msra.mxu1 %v234_v18 }
  0x86   : > { %515 = vmatprep.subr.bf16.mxu0 %v555_v0  ;;  %509 = vmatprep.subr.bf16.mxu1 %v555_v0 }
  0x87   : > { %v292_v22 = vpop.permute.xlu1 %291 }
  0x88   : > { %v297_v24 = vsel %vm169_vm1, %v292_v22, 0 }
  0x8b   : > { %v287_v26 = vpop.permute.xlu1 %286 }
  0x8c   : > { %500 = vmatmul.mubr.msk.bf16.vlgmr.msra.gmra.mxu0 %vm169_vm1, %v157_v5 }
  0x8d   : > { %517 = vmatprep.mubr.msk.bf16.mxu0 %vm556_vm0, %v555_v0 }
 0x14c   : > { %v210_v11 = vpop.f32.mrf.mxu0 }
 0x14d   : > { %v211_v12 = vadd.f32 %v477_v10, %v210_v11 }
 0x14e   : > { %v501_v13 = vpop.f32.mrf.mxu0 }
 0x14f   : > { %v217_v14 = vsel %vm216_vm2, %v211_v12, -inf }
 0x150   : > { %218 = vmax.xlane.f32.xlu0 %v217_v14  ;;  %v213_v15 = vpop.f32.mrf.mxu0 }
 0x152   : > { %v502_v16 = vpop.f32.mrf.mxu0 }
 0x166   : > { %349 = vrot.lane.b32.xlu0 %v482_v7, %s561_s22 }
 0x1d9   : > { %v219_v19 = vpop.xlane.xlu0 %218 }
 0x1da   : > { %v220_v20 = vsub.f32 %v211_v12, %v219_v19 }
 0x1dc   : > { %v221_v21 = vmul.f32 1.442695, %v220_v20 }
 0x1dd   : > { %v350_v37 = vpop.permute.xlu0 %349 }
 0x1de   : > { %539 = vpow2.f32 %v221_v21  ;;  %v355_v38 = vsel %vm232_vm3, %v350_v37, 0 }
 0x1df   : > { %516 = vmatpush3.bf16.msra.mxu0 %v355_v38 }
 0x1eb   : > { %v540_v23 = vpop.eup %539 }
 0x1ec   : > { %v226_v25 = vpack.c.bf16 %v540_v23, %v540_v23  ;;  %v223_v45 = vsel %vm216_vm2, %v540_v23, 0.0 }
 0x1ee   : > { %506 = vmatmul.mubr.msk.bf16.vlgmr.msra.gmra.mxu1 %vm216_vm2, %v226_v25 }
 0x1ef   : > { %510 = vmatpush3.bf16.xpose.msra.mxu1 %v297_v24  ;;  %511 = vmatprep.mubr.msk.bf16.mxu1 %vm556_vm0, %v555_v0 }
 0x1f6   : > { %512 = vmatmul.mubr.msk.bf16.vlgmr.msra.gmra.mxu1 %vm169_vm1, %v287_v26 }
 0x2ae   : > { %v270_v27 = vpop.f32.mrf.mxu1 }
 0x2b0   : > { %v507_v28 = vpop.f32.mrf.mxu1 }
 0x2b2   : > { %v273_v29 = vpop.f32.mrf.mxu1 }
 0x2b4   : > { %v508_v30 = vpop.f32.mrf.mxu1 }
 0x2b6   : > { %v333_v31 = vpop.f32.mrf.mxu1 }
 0x2b7   : > { %v334_v32 = vadd.f32 %v477_v10, %v333_v31 }
 0x2b8   : > { %v513_v33 = vpop.f32.mrf.mxu1 }
 0x2b9   : > { %v339_v34 = vsel %vm216_vm2, %v334_v32, -inf }
 0x2ba   : > { %340 = vmax.xlane.f32.xlu1 %v339_v34  ;;  %v336_v35 = vpop.f32.mrf.mxu1 }
 0x2bc   : > { %v514_v36 = vpop.f32.mrf.mxu1 }
 0x343   : > { %v341_v39 = vpop.xlane.xlu1 %340 }
 0x344   : > { %v342_v40 = vsub.f32 %v334_v32, %v341_v39 }
 0x346   : > { %v343_v41 = vmul.f32 1.442695, %v342_v40 }
 0x348   : > { %541 = vpow2.f32 %v343_v41 }
 0x355   : > { %v542_v42 = vpop.eup %541 }
 0x356   : > { %v345_v43 = vsel %vm216_vm2, %v542_v42, 0.0  ;;  %v348_v44 = vpack.c.bf16 %v542_v42, %v542_v42 }
 0x357   : > { %346 = vadd.xlane.f32.xlu1 %v345_v43 }
 0x358   : > { %518 = vmatmul.mubr.msk.bf16.vlgmr.msra.gmra.mxu0 %vm216_vm2, %v348_v44 }
 0x35b   : > { %224 = vadd.xlane.f32.xlu1 %v223_v45 }
 0x3e0   : > { %v347_v46 = vpop.xlane.xlu1 %346 }
 0x3e4   : > { %v225_v47 = vpop.xlane.xlu1 %224 }
 0x3e5   : > { %543 = vrcp.f32 %v225_v47 }
 0x3e6   : > { %545 = vrcp.f32 %v347_v46 }
 0x3f2   : > { %v544_v48 = vpop.eup %543 }
 0x3f3   : > { %v277_v49 = vmul.f32 %v544_v48, %v270_v27  ;;  %v546_v51 = vpop.eup %545 }
 0x3f5   : > { %v278_v50 = vpack.c.bf16 %v277_v49, %v277_v49 }
 0x3f7   : > { %280 = vst.msk [vmem:[%s152_s25] sm:$0xf] %vm279_vm4, %v278_v50 }
 0x418   : > { %v391_v52 = vpop.f32.mrf.mxu0 }
 0x419   : > { %v398_v53 = vmul.f32 %v546_v51, %v391_v52 }
 0x41a   : > { %v519_v54 = vpop.f32.mrf.mxu0 }
 0x41b   : > { %v488_v55 = vpack.c.bf16 %v398_v53, %v398_v53 }
 0x41c   : > { %v394_v56 = vpop.f32.mrf.mxu0 }
 0x41d   : > { %403 = vrot.lane.b32.xlu1 %v488_v55, %s562_s26 }
 0x41e   : > { %v520_v57 = vpop.f32.mrf.mxu0 }
 0x48f   : > { %v404_v58 = vpop.permute.xlu1 %403 }
 0x490   : > { %407 = vst.msk [vmem:[%s152_s25] sm:$0xf] %vm406_vm5, %v404_v58 }
 0x491 PF: > { %s12_s9 = sadd.s32 1, %s553_s9  }
 0x492   : > { %p9_p4 = scmp.ge.s32.totalorder %s12_s9, 4  }
 0x494   :  { %11 = sbr.rel (!%p9_p4) target bundleno = 1 (0x1), region = 61 }

// kernel: bert_classifier_forward.16
= control target key start
LH: loop header
LB: loop body
LE: loop exit
PB: predicated region body
PF: predicated region fallthrough
CT: control target
= control target key end

     0   :  { %v152_v0 = vmov 0.0   ;;  %vm153_vm0 = vmmov 0   ;;  %vm45_vm1 = vcmask 261120   ;;  %vm116_vm2 = vcmask 519168   ;;  %s192_s1 = inlined_call_operand.vmem [shape: bf16[32,64], index: 1, kind: input, shape index: {}]   ;;  %s193_s0 = inlined_call_operand.vmem [shape: bf16[16,32], index: 0, kind: input, shape index: {}]   ;;  %s194_s2 = inlined_call_operand.vmem [shape: f32[1,64], index: 2, kind: input, shape index: {}]   ;;  %s195_s3 = inlined_call_operand.vmem [shape: bf16[16,64], index: 3, kind: output, shape index: {}]  }
   0x1   :  { %135 = vmatprep.subr.bf16.mxu0 %v152_v0  ;;  %v145_v1 = vld [vmem:[%s192_s1 + $0x8] sm:$0xff]   ;;  %139 = vmatprep.mubr.msk.bf16.mxu0 %vm153_vm0, %v152_v0  ;;  %v146_v2 = vld [vmem:[%s192_s1] sm:$0xff]  }
   0x2   :  { %136 = vmatpush3.bf16.msra.mxu0 %v145_v1  ;;  %v147_v3 = vld [vmem:[%s193_s0] sm:$0xff]  }
   0x3   :  { %137 = vmatprep.subr.bf16.mxu0 %v152_v0  ;;  %v123_v4 = vld [vmem:[%s194_s2] ss:$0 sm:$0xff] }
   0x6   :  { %138 = vmatpush3.bf16.msra.mxu0 %v146_v2 }
   0x9   :  { %140 = vmatmul.mubr.msk.bf16.vlgmr.msra.gmra.mxu0 %vm45_vm1, %v147_v3 }
  0xc9   :  { %v83_v5 = vpop.f32.mrf.mxu0 }
  0xca   :  { %v84_v6 = vadd.f32 %v123_v4, %v83_v5 }
  0xcb   :  { %v141_v7 = vpop.f32.mrf.mxu0 }
  0xcc   :  { %v92_v8 = vmul.f32 0.044715, %v84_v6  ;;  %v90_v22 = vmul.f32 0.5, %v84_v6 }
  0xcd   :  { %v86_v9 = vpop.f32.mrf.mxu0 }
  0xce   :  { %v94_v10 = vmul.f32 %v92_v8, %v84_v6  ;;  %v87_v11 = vadd.f32 %v123_v4, %v86_v9 }
  0xcf   :  { %v142_v12 = vpop.f32.mrf.mxu0 }
  0xd0   :  { %v96_v13 = vmul.f32 %v94_v10, %v84_v6  ;;  %v93_v14 = vmul.f32 0.044715, %v87_v11  ;;  %v91_v27 = vmul.f32 0.5, %v87_v11 }
  0xd2   :  { %v98_v15 = vadd.f32 %v96_v13, %v84_v6  ;;  %v95_v16 = vmul.f32 %v93_v14, %v87_v11 }
  0xd4   :  { %v100_v17 = vmul.f32 0.7978846, %v98_v15  ;;  %v97_v18 = vmul.f32 %v95_v16, %v87_v11 }
  0xd6   :  { %148 = vtanh.f32 %v100_v17  ;;  %v99_v19 = vadd.f32 %v97_v18, %v87_v11 }
  0xd8   :  { %v101_v20 = vmul.f32 0.7978846, %v99_v19 }
  0xda   :  { %150 = vtanh.f32 %v101_v20 }
  0xe3   :  { %v149_v21 = vpop.eup %148 }
  0xe4   :  { %v104_v23 = vadd.f32 1.0, %v149_v21 }
  0xe6   :  { %v106_v24 = vmul.f32 %v104_v23, %v90_v22 }
  0xe7   :  { %v151_v25 = vpop.eup %150 }
  0xe8   :  { %v130_v26 = vpack.c.bf16 %v106_v24, %v106_v24  ;;  %v105_v28 = vadd.f32 1.0, %v151_v25 }
  0xea   :  { %117 = vst.msk [vmem:[%s195_s3] sm:$0xf] %vm116_vm2, %v130_v26  ;;  %v107_v29 = vmul.f32 %v105_v28, %v91_v27 }
  0xec   :  { %v131_v30 = vpack.c.bf16 %v107_v29, %v107_v29 }
  0xee   :  { %118 = vst.msk [vmem:[%s195_s3 + $0x4] sm:$0xf] %vm116_vm2, %v131_v30 }

// kernel: bert_classifier_forward.17
= control target key start
LH: loop header
LB: loop body
LE: loop exit
PB: predicated region body
PF: predicated region fallthrough
CT: control target
= control target key end

     0   :  { %v227_v0 = vmov 0.0   ;;  %vm228_vm0 = vmmov 0   ;;  %vm70_vm1 = vcmask 523264   ;;  %vm121_vm2 = vcmask 261120   ;;  %s301_s1 = inlined_call_operand.vmem [shape: bf16[64,32], index: 1, kind: input, shape index: {}]   ;;  %s302_s0 = inlined_call_operand.vmem [shape: bf16[16,64], index: 0, kind: input, shape index: {}]   ;;  %s303_s3 = inlined_call_operand.vmem [shape: bf16[16,32], index: 3, kind: input, shape index: {}]   ;;  %s304_s2 = inlined_call_operand.vmem [shape: f32[1,32], index: 2, kind: input, shape index: {}]   ;;  %s305_s4 = inlined_call_operand.vmem [shape: f32[1,32], index: 4, kind: input, shape index: {}]   ;;  %s306_s5 = inlined_call_operand.vmem [shape: f32[1,32], index: 5, kind: input, shape index: {}]   ;;  %s307_s6 = inlined_call_operand.vmem [shape: bf16[16,32], index: 6, kind: output, shape index: {}]  }
   0x1   :  { %204 = vmatprep.subr.bf16.mxu0 %v227_v0  ;;  %v218_v1 = vld [vmem:[%s301_s1 + $0x18] sm:$0xff]   ;;  %212 = vmatprep.mubr.msk.bf16.mxu0 %vm228_vm0, %v227_v0  ;;  %v219_v2 = vld [vmem:[%s301_s1 + $0x10] sm:$0xff]   ;;  %v220_v3 = vld [vmem:[%s301_s1 + $0x8] sm:$0xff]   ;;  %vm175_vm3 = vcmask 257024  }
   0x2   :  { %205 = vmatpush3.bf16.msra.mxu0 %v218_v1  ;;  %v221_v4 = vld [vmem:[%s301_s1] sm:$0xff]  }
   0x3   :  { %206 = vmatprep.subr.bf16.mxu0 %v227_v0  ;;  %v222_v5 = vld [vmem:[%s302_s0] sm:$0xff]  }
   0x4   :  { %v196_v6 = vld [vmem:[%s303_s3] sm:$0xff]  }
   0x5   :  { %v182_v7 = vld [vmem:[%s304_s2] ss:$0 sm:$0xff]  ;;  %v197_v8 = vunpack.c.l.bf16 %v196_v6  ;;  %v198_v13 = vunpack.c.h.bf16 %v196_v6 }
   0x6   :  { %207 = vmatpush3.bf16.msra.mxu0 %v219_v2  ;;  %v189_v37 = vld [vmem:[%s305_s4] ss:$0 sm:$0xff] }
   0x7   :  { %208 = vmatprep.subr.bf16.mxu0 %v227_v0  ;;  %v190_v39 = vld [vmem:[%s306_s5] ss:$0 sm:$0xff] }
   0xa   :  { %209 = vmatpush3.bf16.msra.mxu0 %v220_v3 }
   0xb   :  { %210 = vmatprep.subr.bf16.mxu0 %v227_v0 }
   0xe   :  { %211 = vmatpush3.bf16.msra.mxu0 %v221_v4 }
  0x11   :  { %213 = vmatmul.mubr.msk.bf16.vlgmr.msra.gmra.mxu0 %vm70_vm1, %v222_v5 }
  0xd1   :  { %v108_v9 = vpop.f32.mrf.mxu0 }
  0xd2   :  { %v109_v10 = vadd.f32 %v182_v7, %v108_v9 }
  0xd3   :  { %v214_v11 = vpop.f32.mrf.mxu0 }
  0xd4   :  { %v119_v12 = vadd.f32 %v197_v8, %v109_v10 }
  0xd5   :  { %v111_v14 = vpop.f32.mrf.mxu0 }
  0xd6   :  { %v112_v15 = vadd.f32 %v182_v7, %v111_v14  ;;  %v122_v16 = vsel %vm121_vm2, %v119_v12, 0.0 }
  0xd7   :  { %123 = vadd.xlane.f32.xlu0 %v122_v16  ;;  %v215_v17 = vpop.f32.mrf.mxu0 }
  0xd8   :  { %v120_v18 = vadd.f32 %v198_v13, %v112_v15 }
  0xda   :  { %v125_v19 = vsel %vm121_vm2, %v120_v18, 0.0 }
  0xdb   :  { %126 = vadd.xlane.f32.xlu0 %v125_v19 }
 0x160   :  { %v124_v20 = vpop.xlane.xlu0 %123 }
 0x161   :  { %v129_v21 = vmul.f32 0.03125, %v124_v20 }
 0x163   :  { %v131_v22 = vsub.f32 %v119_v12, %v129_v21 }
 0x164   :  { %v127_v23 = vpop.xlane.xlu0 %126 }
 0x165   :  { %v130_v24 = vmul.f32 0.03125, %v127_v23  ;;  %v133_v25 = vmul.f32 %v131_v22, %v131_v22 }
 0x167   :  { %v132_v26 = vsub.f32 %v120_v18, %v130_v24  ;;  %v135_v27 = vsel %vm121_vm2, %v133_v25, 0.0 }
 0x168   :  { %136 = vadd.xlane.f32.xlu1 %v135_v27 }
 0x169   :  { %v134_v28 = vmul.f32 %v132_v26, %v132_v26 }
 0x16b   :  { %v138_v29 = vsel %vm121_vm2, %v134_v28, 0.0 }
 0x16c   :  { %139 = vadd.xlane.f32.xlu1 %v138_v29 }
 0x1f1   :  { %v137_v30 = vpop.xlane.xlu1 %136 }
 0x1f2   :  { %v141_v31 = vmul.f32 0.03125, %v137_v30 }
 0x1f4   :  { %v143_v32 = vadd.f32 1e-12, %v141_v31 }
 0x1f5   :  { %v140_v33 = vpop.xlane.xlu1 %139 }
 0x1f6   :  { %223 = vrsqrt.f32 %v143_v32  ;;  %v142_v34 = vmul.f32 0.03125, %v140_v33 }
 0x1f8   :  { %v144_v35 = vadd.f32 1e-12, %v142_v34 }
 0x1fa   :  { %225 = vrsqrt.f32 %v144_v35 }
 0x203   :  { %v224_v36 = vpop.eup %223 }
 0x204   :  { %v147_v38 = vmul.f32 %v224_v36, %v131_v22 }
 0x206   :  { %v156_v40 = vmul.f32 %v189_v37, %v147_v38 }
 0x207   :  { %v226_v41 = vpop.eup %225 }
 0x208   :  { %v165_v42 = vadd.f32 %v190_v39, %v156_v40  ;;  %v148_v43 = vmul.f32 %v226_v41, %v132_v26 }
 0x20a   :  { %v193_v44 = vpack.c.bf16 %v165_v42, %v165_v42  ;;  %v157_v45 = vmul.f32 %v189_v37, %v148_v43 }
 0x20c   :  { %176 = vst.msk [vmem:[%s307_s6] sm:$0xf] %vm175_vm3, %v193_v44  ;;  %v166_v46 = vadd.f32 %v190_v39, %v157_v45 }
 0x20e   :  { %v194_v47 = vpack.c.bf16 %v166_v46, %v166_v46 }
 0x210   :  { %177 = vst.msk [vmem:[%s307_s6 + $0x4] sm:$0xf] %vm175_vm3, %v194_v47 }

// kernel: bert_classifier_forward.23
= control target key start
LH: loop header
LB: loop body
LE: loop exit
PB: predicated region body
PF: predicated region fallthrough
CT: control target
= control target key end

     0   :  { %v234_v1 = vmov 0.0   ;;  %vm235_vm0 = vmmov 0   ;;  %s293_s0 = inlined_call_operand.vmem [shape: bf16[2,32], index: 0, kind: input, shape index: {}]   ;;  %s294_s1 = inlined_call_operand.vmem [shape: bf16[32,32], index: 1, kind: input, shape index: {}]   ;;  %s295_s2 = inlined_call_operand.vmem [shape: f32[1,32], index: 2, kind: input, shape index: {}]   ;;  %s296_s3 = inlined_call_operand.vmem [shape: bf16[32,128], index: 3, kind: input, shape index: {}]   ;;  %s297_s4 = inlined_call_operand.vmem [shape: f32[1,128], index: 4, kind: input, shape index: {}]   ;;  %s298_s5 = inlined_call_operand.hbm [shape: f32[2,128], index: 5, kind: output, shape index: {}]  }
   0x1   :  { %v206_v0 = vld [vmem:[%s294_s1 + $0x8] sm:$0xff]   ;;  %187 = vmatprep.subr.bf16.mxu0 %v234_v1  ;;  %195 = vmatprep.subr.bf16.mxu1 %v234_v1  ;;  %v207_v2 = vld [vmem:[%s294_s1] sm:$0xff]  }
   0x2   :  { %188 = vmatpush3.bf16.msra.mxu0 %v206_v0  ;;  %191 = vmatprep.mubr.msk.bf16.mxu0 %vm235_vm0, %v234_v1 }
   0x3   :  { %189 = vmatprep.subr.bf16.mxu0 %v234_v1  ;;  %199 = vmatprep.mubr.msk.bf16.mxu1 %vm235_vm0, %v234_v1 }
   0x4   :  { %10 = vsyncpa [#allocation3], 0  ;;  %v22_v3 = vld [vmem:[%s293_s0] sm:$0x1]  ;;  %vm46_vm1 = vcmask 261120   ;;  %v208_v4 = vld [vmem:[%s296_s3 + $0x8] sm:$0xff]  }
   0x5   :  { %196 = vmatpush3.bf16.msra.mxu1 %v208_v4  ;;  %v209_v5 = vld [vmem:[%s296_s3] sm:$0xff]   ;;  %s236_s3 = smov [#allocation2]  }
   0x6   :  { %190 = vmatpush3.bf16.msra.mxu0 %v207_v2  ;;  %197 = vmatprep.subr.bf16.mxu1 %v234_v1  ;;  %v173_v6 = vld [vmem:[%s295_s2] ss:$0 sm:$0xff]  ;;  %s165_s30 = sshll.u32 %s236_s3, 4  ;;  %s166_s30 = int_to_ptr.vmem [resolvable:$true] %s165_s30 }
   0x7   :  { %v177_v14 = vld [vmem:[%s297_s4] ss:$0 sm:$0xff]  ;;  %s212_s2 = scalar_lea.vmem %s166_s30, 32  ;;  %p217_p1 = scmp.lt.s32.totalorder %s166_s30, %s166_s30 }
   0x8   :  { %p213_p0 = scmp.ne.s32.totalorder %s166_s30, %s212_s2  ;;  %p218_p2 = scmp.lt.s32.totalorder %s212_s2, %s212_s2 }
   0x9   :  { %192 = vmatmul.mubr.msk.bf16.vlgmr.msra.gmra.mxu0 %vm46_vm1, %v22_v3  ;;  %198 = vmatpush3.bf16.msra.mxu1 %v209_v5 }
   0xa   :  { %p219_p3 = por %p218_p2, %p217_p1 }
   0xc   :  { %p220_p4 = pnand %p219_p3, %p213_p0 }
  0xc9   :  { %v84_v7 = vpop.f32.mrf.mxu0 }
  0xca   :  { %v85_v8 = vadd.f32 %v173_v6, %v84_v7 }
  0xcb   :  { %v193_v9 = vpop.f32.mrf.mxu0 }
  0xcc   :  { %210 = vtanh.f32 %v85_v8 }
  0xcd   :  { %v87_v10 = vpop.f32.mrf.mxu0 }
  0xcf   :  { %v194_v11 = vpop.f32.mrf.mxu0 }
  0xd9   :  { %v211_v12 = vpop.eup %210 }
  0xda   :  { %v91_v13 = vpack.c.bf16 %v211_v12, %v211_v12 }
  0xdc   :  { %200 = vmatmul.mubr.msk.bf16.vlgmr.msra.gmra.mxu1 %vm46_vm1, %v91_v13 }
 0x19c   :  { %v152_v15 = vpop.f32.mrf.mxu1 }
 0x19d   :  { %v153_v16 = vadd.f32 %v177_v14, %v152_v15 }
 0x19e   :  { %v201_v17 = vpop.f32.mrf.mxu1 }
 0x19f   :  { %158 = vst [vmem:[#allocation2] sm:$0x3] %v153_v16 }
 0x1a0   :  { %v155_v18 = vpop.f32.mrf.mxu1 }
 0x1a1   :  { %223 = shalt.err (!%p220_p4)
}
 0x1a2   :  { %168 = dma.vmem_to_hbm [thread:$0]  %s166_s30, 32, %s298_s5, [#allocation3]   ;;  %v202_v19 = vpop.f32.mrf.mxu1 }
 0x1a3   :  { %232 = dma.done.wait [#allocation3], 32  }
 0x1a4   :  { %233 = vsyncadd [#allocation3], 4294967264 }
 0x1a5   :  { %172 = vsyncpa [#allocation3], 1 }

</bundles_post_ra>
